<compile_context>
chip_gen: v6e
topology: v6e:2x2x1
jax: 0.10.0
libtpu: 0.0.40
codegen_flags: <defaults>
</compile_context>

<pallas_src>
import functools

import jax
import jax.numpy as jnp
from jax.experimental import pallas as pl
from jax.experimental.pallas import tpu as pltpu


def _round_up(x, m):
    return ((x + m - 1) // m) * m


def _num_tensorcores_per_chip():
    """2 TensorCores on v7x-class chips, 1 on v5e/v6e (best-effort detection)."""
    try:
        kind = jax.devices()[0].device_kind.lower()
        if "v7" in kind:
            return 2
    except Exception:
        pass
    return 1


def _lstm_recurrent_kernel(xp_ref, whh_hbm_ref, hs_ref,
                           whh_vmem, h_ref, c_ref, dma_sem, *,
                           hidden_pad, t_block):
    """One grid step = t_block timesteps of the LSTM recurrence.

    Grid = (batch_blocks [parallel], time_blocks [arbitrary]).  h_ref / c_ref
    persist in VMEM scratch across grid steps, so the time axis MUST remain the
    innermost ("arbitrary") grid dimension — do not reorder the grid.

    xp_ref : (t_block, B_BLK, 4*Hp) bf16  precomputed x_t @ W_ih^T + bias
    whh_hbm_ref : (Hp, 4*Hp) bf16         raw HBM ref (memory_space=pl.ANY)
    hs_ref : (t_block, B_BLK, Hp) bf16    per-step hidden states (output)
    whh_vmem : (Hp, 4*Hp) bf16            resident copy of W_hh^T
    h_ref, c_ref : (B_BLK, Hp) f32        carries
    """
    t = pl.program_id(1)
    H = hidden_pad

    @pl.when(t == 0)
    def _():
        # Reset carries for this batch block and pull W_hh^T into VMEM once.
        h_ref[...] = jnp.zeros_like(h_ref)
        c_ref[...] = jnp.zeros_like(c_ref)
        cp = pltpu.make_async_copy(whh_hbm_ref, whh_vmem, dma_sem)
        cp.start()
        cp.wait()

    h = h_ref[...]
    c = c_ref[...]
    whh = whh_vmem[...]                       # (Hp, 4*Hp) bf16, stays resident

    def sigmoid(v):                           # one EUP op instead of exp + div
        return 0.5 * jnp.tanh(0.5 * v) + 0.5

    # Fully unrolled at trace time: straight-line code for the scheduler; only
    # the (B_BLK, Hp) x (Hp, 4*Hp) bf16 matmul sits on the serial path.
    for tt in range(t_block):
        gates = (xp_ref[tt].astype(jnp.float32)
                 + jnp.dot(h.astype(jnp.bfloat16), whh,
                           preferred_element_type=jnp.float32))
        i_g = sigmoid(gates[:, 0 * H:1 * H])   # lane-tile aligned (H multiple of 128)
        f_g = sigmoid(gates[:, 1 * H:2 * H])
        g_g = jnp.tanh(gates[:, 2 * H:3 * H])
        o_g = sigmoid(gates[:, 3 * H:4 * H])
        c = f_g * c + i_g * g_g
        h = o_g * jnp.tanh(c)
        hs_ref[tt] = h.astype(hs_ref.dtype)

    h_ref[...] = h
    c_ref[...] = c


def lstm_rnn_forward(x, params, *, t_block=None, b_block=None):
    """x: (S, B, I) float32 (seq-first, like nn.LSTM default). Returns (S, B, O)."""
    S, B, I = x.shape
    H = params["w_hh"].shape[1]
    O = params["w_fc"].shape[0]
    Hp = _round_up(H, 128)                     # lane-aligned hidden size

    # ---- re-layout weights with each gate padded to Hp --------------------
    def pad_gate_axis(w):                      # (4H, ...) -> (4*Hp, ...)
        rest = w.shape[1:]
        w4 = w.reshape(4, H, *rest)
        pad_width = [(0, 0), (0, Hp - H)] + [(0, 0)] * len(rest)
        return jnp.pad(w4, pad_width).reshape(4 * Hp, *rest)

    w_ih = pad_gate_axis(params["w_ih"].astype(jnp.float32))            # (4Hp, I)
    w_hh = pad_gate_axis(params["w_hh"].astype(jnp.float32))            # (4Hp, H)
    w_hh = jnp.pad(w_hh, ((0, 0), (0, Hp - H)))                         # (4Hp, Hp)
    bias = pad_gate_axis((params["b_ih"] + params["b_hh"]).astype(jnp.float32))

    wih_t = w_ih.T                                                      # (I, 4Hp)
    whh_t = w_hh.T.astype(jnp.bfloat16)                                 # (Hp, 4Hp)
    wfc_t = params["w_fc"].T.astype(jnp.float32)                        # (H, O)
    bfc = params["b_fc"].astype(jnp.float32)                            # (O,)

    # ---- batch / seq padding and block sizes -------------------------------
    Bp = max(16, _round_up(B, 16))             # 16: bf16 sublane-pair safe
    n_tc = _num_tensorcores_per_chip()
    if b_block is not None:
        B_BLK = b_block
    elif n_tc >= 2 and Bp >= 256 and Bp % 32 == 0:
        B_BLK = Bp // 2                        # one batch block per v7x TensorCore
    else:
        B_BLK = Bp                             # single-TC chips: one full block
    assert Bp % B_BLK == 0, "b_block must divide padded batch"
    assert B_BLK == Bp or B_BLK % 16 == 0, "b_block must be a multiple of 16"

    T_BLK = t_block if t_block is not None else max(1, min(S, 16))
    Sp = _round_up(S, T_BLK)
    n_b = Bp // B_BLK
    n_t = Sp // T_BLK

    # ---- hoisted input projection: one large MXU-friendly matmul (XLA) -----
    x_p = jnp.zeros((Sp, Bp, I), jnp.float32).at[:S, :B, :].set(
        x.astype(jnp.float32))
    xp = (jnp.einsum("sbi,ig->sbg", x_p, wih_t,
                     preferred_element_type=jnp.float32)
          + bias[None, None, :]).astype(jnp.bfloat16)                   # (Sp, Bp, 4Hp)

    # ---- explicit VMEM budget ----------------------------------------------
    xp_blk = T_BLK * B_BLK * 4 * Hp * 2        # bf16, double-buffered
    hs_blk = T_BLK * B_BLK * Hp * 2
    whh_bytes = Hp * 4 * Hp * 2
    hc_bytes = B_BLK * Hp * 4
    vmem_need = 2 * xp_blk + 2 * hs_blk + whh_bytes + 2 * hc_bytes
    vmem_limit = int(min(max(vmem_need + (4 << 20), 32 << 20), 100 << 20))

    cost = pl.CostEstimate(
        flops=int(2 * Sp * Bp * Hp * 4 * Hp + 10 * Sp * Bp * Hp),
        transcendentals=int(5 * Sp * Bp * Hp),
        bytes_accessed=int(xp.size * 2 + whh_bytes + Sp * Bp * Hp * 2),
    )

    kernel = functools.partial(_lstm_recurrent_kernel,
                               hidden_pad=Hp, t_block=T_BLK)

    hs = pl.pallas_call(
        kernel,
        out_shape=jax.ShapeDtypeStruct((Sp, Bp, Hp), jnp.bfloat16),
        grid_spec=pltpu.PrefetchScalarGridSpec(
            num_scalar_prefetch=0,
            grid=(n_b, n_t),                   # batch blocks (parallel), time (serial)
            in_specs=[
                pl.BlockSpec((T_BLK, B_BLK, 4 * Hp), lambda b, t: (t, b, 0)),  # X_proj
                pl.BlockSpec(memory_space=pl.ANY),   # W_hh^T stays in HBM; manual DMA
            ],
            out_specs=pl.BlockSpec((T_BLK, B_BLK, Hp), lambda b, t: (t, b, 0)),
            scratch_shapes=[
                pltpu.VMEM((Hp, 4 * Hp), jnp.bfloat16),   # resident W_hh^T
                pltpu.VMEM((B_BLK, Hp), jnp.float32),     # h carry
                pltpu.VMEM((B_BLK, Hp), jnp.float32),     # c carry
                pltpu.SemaphoreType.DMA(()),              # W_hh DMA semaphore
            ],
        ),
        compiler_params=pltpu.CompilerParams(
            dimension_semantics=("parallel", "arbitrary"),
            vmem_limit_bytes=vmem_limit),
        cost_estimate=cost,
    )(xp, whh_t)

    hs = hs[:S, :B, :H].astype(jnp.float32)                             # (S, B, H)

    # ---- hoisted FC head: one batched matmul (XLA) --------------------------
    y = hs.reshape(S * B, H) @ wfc_t + bfc[None, :]
    return y.reshape(S, B, O)


def init_params(key, input_size, hidden_size, output_size):
    """Deterministic init mimicking PyTorch's U(-1/sqrt(H), 1/sqrt(H))."""
    ks = jax.random.split(key, 6)
    bound = 1.0 / (hidden_size ** 0.5)
    u = lambda k, shape: jax.random.uniform(k, shape, jnp.float32, -bound, bound)
    return {
        "w_ih": u(ks[0], (4 * hidden_size, input_size)),
        "w_hh": u(ks[1], (4 * hidden_size, hidden_size)),
        "b_ih": u(ks[2], (4 * hidden_size,)),
        "b_hh": u(ks[3], (4 * hidden_size,)),
        "w_fc": u(ks[4], (output_size, hidden_size)),
        "b_fc": u(ks[5], (output_size,)),
    }


def lstm_rnn_reference(x, params):
    """Pure-JAX f32 reference (lax.scan) matching PyTorch LSTM + Linear."""
    S, B, I = x.shape
    H = params["w_hh"].shape[1]
    wih_t = params["w_ih"].T
    whh_t = params["w_hh"].T
    b = params["b_ih"] + params["b_hh"]

    def step(carry, x_t):
        h, c = carry
        gates = x_t @ wih_t + h @ whh_t + b
        i_g = jax.nn.sigmoid(gates[:, 0 * H:1 * H])
        f_g = jax.nn.sigmoid(gates[:, 1 * H:2 * H])
        g_g = jnp.tanh(gates[:, 2 * H:3 * H])
        o_g = jax.nn.sigmoid(gates[:, 3 * H:4 * H])
        c = f_g * c + i_g * g_g
        h = o_g * jnp.tanh(c)
        return (h, c), h

    h0 = jnp.zeros((B, H), jnp.float32)
    c0 = jnp.zeros((B, H), jnp.float32)
    _, hs = jax.lax.scan(step, (h0, c0), x)          # (S, B, H)
    y = hs.reshape(S * B, H) @ params["w_fc"].T + params["b_fc"]
    return y.reshape(S, B, -1)


if __name__ == "__main__":
    SEQ, BATCH, INPUT, HIDDEN, OUTPUT = 8, 2, 4, 32, 4

    key = jax.random.PRNGKey(0)
    k_x, k_p = jax.random.split(key)
    x = jax.random.normal(k_x, (SEQ, BATCH, INPUT), dtype=jnp.float32)
    params = init_params(k_p, INPUT, HIDDEN, OUTPUT)

    y = lstm_rnn_forward(x, params)
    y = jax.block_until_ready(y)

    y_ref = lstm_rnn_reference(x, params)
    assert y.shape == (SEQ, BATCH, OUTPUT)
    # bf16 streaming / bf16 MXU recurrence (f32 accumulation) -> looser tolerance.
    assert jnp.allclose(y, y_ref, atol=2e-2, rtol=2e-2), "mismatch vs reference"

    print("KERNEL_OK")
</pallas_src>

<mosaic_0001>
module attributes {stable_mosaic.version = 11 : i64} {
  func.func @_lstm_recurrent_kernel(%arg0: i32, %arg1: i32, %arg2: memref<8x16x512xbf16, #tpu.memory_space<vmem>>, %arg3: memref<128x512xbf16, #tpu.memory_space<any>>, %arg4: memref<8x16x128xbf16, #tpu.memory_space<vmem>>, %arg5: memref<128x512xbf16, #tpu.memory_space<vmem>>, %arg6: memref<16x128xf32, #tpu.memory_space<vmem>>, %arg7: memref<16x128xf32, #tpu.memory_space<vmem>>, %arg8: memref<!tpu.dma_semaphore, #tpu.memory_space<semaphore_mem>>) attributes {dimension_semantics = [#tpu.dimension_semantics<parallel>, #tpu.dimension_semantics<arbitrary>], iteration_bounds = array<i64: 1, 1>, scalar_prefetch = 0 : i64, scratch_operands = 4 : i64, tpu.core_type = #tpu.core_type<tc>, window_params = [{transform_indices = @transform_0, window_bounds = array<i64: 8, 16, 512>}, {}, {transform_indices = @transform_2, window_bounds = array<i64: 8, 16, 128>}]} {
    %c0_i32 = arith.constant 0 : i32
    %0 = arith.cmpi eq, %arg1, %c0_i32 : i32
    %1 = arith.extui %0 : i1 to i32
    %c0_i32_0 = arith.constant 0 : i32
    %2 = arith.cmpi ne, %1, %c0_i32_0 : i32
    scf.if %2 {
      %cst_130 = arith.constant 0.000000e+00 : f32
      %336 = vector.broadcast %cst_130 : f32 to vector<16x128xf32>
      %c0_131 = arith.constant 0 : index
      %c0_132 = arith.constant 0 : index
      %337 = vector.load %arg6[%c0_131, %c0_132] : memref<16x128xf32, #tpu.memory_space<vmem>>, vector<16x128xf32>
      tpu.vector_store %arg6[%c0_131, %c0_132], %336 {strides = array<i32>} : memref<16x128xf32, #tpu.memory_space<vmem>>, vector<16x128xf32>,
      %cst_133 = arith.constant 0.000000e+00 : f32
      %338 = vector.broadcast %cst_133 : f32 to vector<16x128xf32>
      %c0_134 = arith.constant 0 : index
      %c0_135 = arith.constant 0 : index
      %339 = vector.load %arg7[%c0_134, %c0_135] : memref<16x128xf32, #tpu.memory_space<vmem>>, vector<16x128xf32>
      tpu.vector_store %arg7[%c0_134, %c0_135], %338 {strides = array<i32>} : memref<16x128xf32, #tpu.memory_space<vmem>>, vector<16x128xf32>,
      tpu.enqueue_dma source(%arg3 : memref<128x512xbf16, #tpu.memory_space<any>>) target(%arg5 : memref<128x512xbf16, #tpu.memory_space<vmem>>) target_semaphore(%arg8 : memref<!tpu.dma_semaphore, #tpu.memory_space<semaphore_mem>>)
      tpu.wait_dma2 semaphore(%arg8 : memref<!tpu.dma_semaphore, #tpu.memory_space<semaphore_mem>>) src(%arg3 : memref<128x512xbf16, #tpu.memory_space<any>>) dst(%arg5 : memref<128x512xbf16, #tpu.memory_space<vmem>>)
    } else {
    }
    %c0 = arith.constant 0 : index
    %c0_1 = arith.constant 0 : index
    %3 = vector.load %arg6[%c0, %c0_1] : memref<16x128xf32, #tpu.memory_space<vmem>>, vector<16x128xf32>
    %c0_2 = arith.constant 0 : index
    %c0_3 = arith.constant 0 : index
    %4 = vector.load %arg7[%c0_2, %c0_3] : memref<16x128xf32, #tpu.memory_space<vmem>>, vector<16x128xf32>
    %c0_4 = arith.constant 0 : index
    %c0_5 = arith.constant 0 : index
    %5 = vector.load %arg5[%c0_4, %c0_5] : memref<128x512xbf16, #tpu.memory_space<vmem>>, vector<128x512xbf16>
    %c0_6 = arith.constant 0 : index
    %c0_7 = arith.constant 0 : index
    %c0_8 = arith.constant 0 : index
    %6 = vector.load %arg2[%c0_6, %c0_7, %c0_8] : memref<8x16x512xbf16, #tpu.memory_space<vmem>>, vector<1x16x512xbf16>
    %7 = vector.shape_cast %6 : vector<1x16x512xbf16> to vector<16x512xbf16>
    %8 = arith.extf %7 : vector<16x512xbf16> to vector<16x512xf32>
    %9 = arith.truncf %3 : vector<16x128xf32> to vector<16x128xbf16>
    %cst = arith.constant dense<0.000000e+00> : vector<16x512xf32>
    %10 = tpu.matmul %9, %5, %cst {dimension_numbers = #tpu.dot_dimension_numbers<[1], [0], [0], [1], [0, 0, 1, 1], [], []>} : vector<16x128xbf16>, vector<128x512xbf16>, vector<16x512xf32> -> vector<16x512xf32>
    %11 = arith.addf %8, %10 : vector<16x512xf32>
    %12 = vector.extract_strided_slice %11 {offsets = [0, 0], sizes = [16, 128], strides = [1, 1]} : vector<16x512xf32> to vector<16x128xf32>
    %cst_9 = arith.constant 5.000000e-01 : f32
    %13 = vector.broadcast %cst_9 : f32 to vector<16x128xf32>
    %14 = arith.mulf %13, %12 : vector<16x128xf32>
    %15 = math.tanh %14 : vector<16x128xf32>
    %cst_10 = arith.constant 5.000000e-01 : f32
    %16 = vector.broadcast %cst_10 : f32 to vector<16x128xf32>
    %17 = arith.mulf %16, %15 : vector<16x128xf32>
    %cst_11 = arith.constant 5.000000e-01 : f32
    %18 = vector.broadcast %cst_11 : f32 to vector<16x128xf32>
    %19 = arith.addf %17, %18 : vector<16x128xf32>
    %20 = vector.extract_strided_slice %11 {offsets = [0, 128], sizes = [16, 128], strides = [1, 1]} : vector<16x512xf32> to vector<16x128xf32>
    %cst_12 = arith.constant 5.000000e-01 : f32
    %21 = vector.broadcast %cst_12 : f32 to vector<16x128xf32>
    %22 = arith.mulf %21, %20 : vector<16x128xf32>
    %23 = math.tanh %22 : vector<16x128xf32>
    %cst_13 = arith.constant 5.000000e-01 : f32
    %24 = vector.broadcast %cst_13 : f32 to vector<16x128xf32>
    %25 = arith.mulf %24, %23 : vector<16x128xf32>
    %cst_14 = arith.constant 5.000000e-01 : f32
    %26 = vector.broadcast %cst_14 : f32 to vector<16x128xf32>
    %27 = arith.addf %25, %26 : vector<16x128xf32>
    %28 = vector.extract_strided_slice %11 {offsets = [0, 256], sizes = [16, 128], strides = [1, 1]} : vector<16x512xf32> to vector<16x128xf32>
    %29 = math.tanh %28 : vector<16x128xf32>
    %30 = vector.extract_strided_slice %11 {offsets = [0, 384], sizes = [16, 128], strides = [1, 1]} : vector<16x512xf32> to vector<16x128xf32>
    %cst_15 = arith.constant 5.000000e-01 : f32
    %31 = vector.broadcast %cst_15 : f32 to vector<16x128xf32>
    %32 = arith.mulf %31, %30 : vector<16x128xf32>
    %33 = math.tanh %32 : vector<16x128xf32>
    %cst_16 = arith.constant 5.000000e-01 : f32
    %34 = vector.broadcast %cst_16 : f32 to vector<16x128xf32>
    %35 = arith.mulf %34, %33 : vector<16x128xf32>
    %cst_17 = arith.constant 5.000000e-01 : f32
    %36 = vector.broadcast %cst_17 : f32 to vector<16x128xf32>
    %37 = arith.addf %35, %36 : vector<16x128xf32>
    %38 = arith.mulf %27, %4 : vector<16x128xf32>
    %39 = arith.mulf %19, %29 : vector<16x128xf32>
    %40 = arith.addf %38, %39 : vector<16x128xf32>
    %41 = math.tanh %40 : vector<16x128xf32>
    %42 = arith.mulf %37, %41 : vector<16x128xf32>
    %43 = arith.truncf %42 : vector<16x128xf32> to vector<16x128xbf16>
    %c0_18 = arith.constant 0 : index
    %c0_19 = arith.constant 0 : index
    %c0_20 = arith.constant 0 : index
    %44 = vector.load %arg4[%c0_18, %c0_19, %c0_20] : memref<8x16x128xbf16, #tpu.memory_space<vmem>>, vector<1x16x128xbf16>
    %45 = vector.shape_cast %44 : vector<1x16x128xbf16> to vector<16x128xbf16>
    %46 = vector.shape_cast %43 : vector<16x128xbf16> to vector<1x16x128xbf16>
    tpu.vector_store %arg4[%c0_18, %c0_19, %c0_20], %46 {strides = array<i32>} : memref<8x16x128xbf16, #tpu.memory_space<vmem>>, vector<1x16x128xbf16>,
    %c1 = arith.constant 1 : index
    %c0_21 = arith.constant 0 : index
    %c0_22 = arith.constant 0 : index
    %47 = vector.load %arg2[%c1, %c0_21, %c0_22] : memref<8x16x512xbf16, #tpu.memory_space<vmem>>, vector<1x16x512xbf16>
    %48 = vector.shape_cast %47 : vector<1x16x512xbf16> to vector<16x512xbf16>
    %49 = arith.extf %48 : vector<16x512xbf16> to vector<16x512xf32>
    %50 = arith.truncf %42 : vector<16x128xf32> to vector<16x128xbf16>
    %cst_23 = arith.constant dense<0.000000e+00> : vector<16x512xf32>
    %51 = tpu.matmul %50, %5, %cst_23 {dimension_numbers = #tpu.dot_dimension_numbers<[1], [0], [0], [1], [0, 0, 1, 1], [], []>} : vector<16x128xbf16>, vector<128x512xbf16>, vector<16x512xf32> -> vector<16x512xf32>
    %52 = arith.addf %49, %51 : vector<16x512xf32>
    %53 = vector.extract_strided_slice %52 {offsets = [0, 0], sizes = [16, 128], strides = [1, 1]} : vector<16x512xf32> to vector<16x128xf32>
    %cst_24 = arith.constant 5.000000e-01 : f32
    %54 = vector.broadcast %cst_24 : f32 to vector<16x128xf32>
    %55 = arith.mulf %54, %53 : vector<16x128xf32>
    %56 = math.tanh %55 : vector<16x128xf32>
    %cst_25 = arith.constant 5.000000e-01 : f32
    %57 = vector.broadcast %cst_25 : f32 to vector<16x128xf32>
    %58 = arith.mulf %57, %56 : vector<16x128xf32>
    %cst_26 = arith.constant 5.000000e-01 : f32
    %59 = vector.broadcast %cst_26 : f32 to vector<16x128xf32>
    %60 = arith.addf %58, %59 : vector<16x128xf32>
    %61 = vector.extract_strided_slice %52 {offsets = [0, 128], sizes = [16, 128], strides = [1, 1]} : vector<16x512xf32> to vector<16x128xf32>
    %cst_27 = arith.constant 5.000000e-01 : f32
    %62 = vector.broadcast %cst_27 : f32 to vector<16x128xf32>
    %63 = arith.mulf %62, %61 : vector<16x128xf32>
    %64 = math.tanh %63 : vector<16x128xf32>
    %cst_28 = arith.constant 5.000000e-01 : f32
    %65 = vector.broadcast %cst_28 : f32 to vector<16x128xf32>
    %66 = arith.mulf %65, %64 : vector<16x128xf32>
    %cst_29 = arith.constant 5.000000e-01 : f32
    %67 = vector.broadcast %cst_29 : f32 to vector<16x128xf32>
    %68 = arith.addf %66, %67 : vector<16x128xf32>
    %69 = vector.extract_strided_slice %52 {offsets = [0, 256], sizes = [16, 128], strides = [1, 1]} : vector<16x512xf32> to vector<16x128xf32>
    %70 = math.tanh %69 : vector<16x128xf32>
    %71 = vector.extract_strided_slice %52 {offsets = [0, 384], sizes = [16, 128], strides = [1, 1]} : vector<16x512xf32> to vector<16x128xf32>
    %cst_30 = arith.constant 5.000000e-01 : f32
    %72 = vector.broadcast %cst_30 : f32 to vector<16x128xf32>
    %73 = arith.mulf %72, %71 : vector<16x128xf32>
    %74 = math.tanh %73 : vector<16x128xf32>
    %cst_31 = arith.constant 5.000000e-01 : f32
    %75 = vector.broadcast %cst_31 : f32 to vector<16x128xf32>
    %76 = arith.mulf %75, %74 : vector<16x128xf32>
    %cst_32 = arith.constant 5.000000e-01 : f32
    %77 = vector.broadcast %cst_32 : f32 to vector<16x128xf32>
    %78 = arith.addf %76, %77 : vector<16x128xf32>
    %79 = arith.mulf %68, %40 : vector<16x128xf32>
    %80 = arith.mulf %60, %70 : vector<16x128xf32>
    %81 = arith.addf %79, %80 : vector<16x128xf32>
    %82 = math.tanh %81 : vector<16x128xf32>
    %83 = arith.mulf %78, %82 : vector<16x128xf32>
    %84 = arith.truncf %83 : vector<16x128xf32> to vector<16x128xbf16>
    %c1_33 = arith.constant 1 : index
    %c0_34 = arith.constant 0 : index
    %c0_35 = arith.constant 0 : index
    %85 = vector.load %arg4[%c1_33, %c0_34, %c0_35] : memref<8x16x128xbf16, #tpu.memory_space<vmem>>, vector<1x16x128xbf16>
    %86 = vector.shape_cast %85 : vector<1x16x128xbf16> to vector<16x128xbf16>
    %87 = vector.shape_cast %84 : vector<16x128xbf16> to vector<1x16x128xbf16>
    tpu.vector_store %arg4[%c1_33, %c0_34, %c0_35], %87 {strides = array<i32>} : memref<8x16x128xbf16, #tpu.memory_space<vmem>>, vector<1x16x128xbf16>,
    %c2 = arith.constant 2 : index
    %c0_36 = arith.constant 0 : index
    %c0_37 = arith.constant 0 : index
    %88 = vector.load %arg2[%c2, %c0_36, %c0_37] : memref<8x16x512xbf16, #tpu.memory_space<vmem>>, vector<1x16x512xbf16>
    %89 = vector.shape_cast %88 : vector<1x16x512xbf16> to vector<16x512xbf16>
    %90 = arith.extf %89 : vector<16x512xbf16> to vector<16x512xf32>
    %91 = arith.truncf %83 : vector<16x128xf32> to vector<16x128xbf16>
    %cst_38 = arith.constant dense<0.000000e+00> : vector<16x512xf32>
    %92 = tpu.matmul %91, %5, %cst_38 {dimension_numbers = #tpu.dot_dimension_numbers<[1], [0], [0], [1], [0, 0, 1, 1], [], []>} : vector<16x128xbf16>, vector<128x512xbf16>, vector<16x512xf32> -> vector<16x512xf32>
    %93 = arith.addf %90, %92 : vector<16x512xf32>
    %94 = vector.extract_strided_slice %93 {offsets = [0, 0], sizes = [16, 128], strides = [1, 1]} : vector<16x512xf32> to vector<16x128xf32>
    %cst_39 = arith.constant 5.000000e-01 : f32
    %95 = vector.broadcast %cst_39 : f32 to vector<16x128xf32>
    %96 = arith.mulf %95, %94 : vector<16x128xf32>
    %97 = math.tanh %96 : vector<16x128xf32>
    %cst_40 = arith.constant 5.000000e-01 : f32
    %98 = vector.broadcast %cst_40 : f32 to vector<16x128xf32>
    %99 = arith.mulf %98, %97 : vector<16x128xf32>
    %cst_41 = arith.constant 5.000000e-01 : f32
    %100 = vector.broadcast %cst_41 : f32 to vector<16x128xf32>
    %101 = arith.addf %99, %100 : vector<16x128xf32>
    %102 = vector.extract_strided_slice %93 {offsets = [0, 128], sizes = [16, 128], strides = [1, 1]} : vector<16x512xf32> to vector<16x128xf32>
    %cst_42 = arith.constant 5.000000e-01 : f32
    %103 = vector.broadcast %cst_42 : f32 to vector<16x128xf32>
    %104 = arith.mulf %103, %102 : vector<16x128xf32>
    %105 = math.tanh %104 : vector<16x128xf32>
    %cst_43 = arith.constant 5.000000e-01 : f32
    %106 = vector.broadcast %cst_43 : f32 to vector<16x128xf32>
    %107 = arith.mulf %106, %105 : vector<16x128xf32>
    %cst_44 = arith.constant 5.000000e-01 : f32
    %108 = vector.broadcast %cst_44 : f32 to vector<16x128xf32>
    %109 = arith.addf %107, %108 : vector<16x128xf32>
    %110 = vector.extract_strided_slice %93 {offsets = [0, 256], sizes = [16, 128], strides = [1, 1]} : vector<16x512xf32> to vector<16x128xf32>
    %111 = math.tanh %110 : vector<16x128xf32>
    %112 = vector.extract_strided_slice %93 {offsets = [0, 384], sizes = [16, 128], strides = [1, 1]} : vector<16x512xf32> to vector<16x128xf32>
    %cst_45 = arith.constant 5.000000e-01 : f32
    %113 = vector.broadcast %cst_45 : f32 to vector<16x128xf32>
    %114 = arith.mulf %113, %112 : vector<16x128xf32>
    %115 = math.tanh %114 : vector<16x128xf32>
    %cst_46 = arith.constant 5.000000e-01 : f32
    %116 = vector.broadcast %cst_46 : f32 to vector<16x128xf32>
    %117 = arith.mulf %116, %115 : vector<16x128xf32>
    %cst_47 = arith.constant 5.000000e-01 : f32
    %118 = vector.broadcast %cst_47 : f32 to vector<16x128xf32>
    %119 = arith.addf %117, %118 : vector<16x128xf32>
    %120 = arith.mulf %109, %81 : vector<16x128xf32>
    %121 = arith.mulf %101, %111 : vector<16x128xf32>
    %122 = arith.addf %120, %121 : vector<16x128xf32>
    %123 = math.tanh %122 : vector<16x128xf32>
    %124 = arith.mulf %119, %123 : vector<16x128xf32>
    %125 = arith.truncf %124 : vector<16x128xf32> to vector<16x128xbf16>
    %c2_48 = arith.constant 2 : index
    %c0_49 = arith.constant 0 : index
    %c0_50 = arith.constant 0 : index
    %126 = vector.load %arg4[%c2_48, %c0_49, %c0_50] : memref<8x16x128xbf16, #tpu.memory_space<vmem>>, vector<1x16x128xbf16>
    %127 = vector.shape_cast %126 : vector<1x16x128xbf16> to vector<16x128xbf16>
    %128 = vector.shape_cast %125 : vector<16x128xbf16> to vector<1x16x128xbf16>
    tpu.vector_store %arg4[%c2_48, %c0_49, %c0_50], %128 {strides = array<i32>} : memref<8x16x128xbf16, #tpu.memory_space<vmem>>, vector<1x16x128xbf16>,
    %c3 = arith.constant 3 : index
    %c0_51 = arith.constant 0 : index
    %c0_52 = arith.constant 0 : index
    %129 = vector.load %arg2[%c3, %c0_51, %c0_52] : memref<8x16x512xbf16, #tpu.memory_space<vmem>>, vector<1x16x512xbf16>
    %130 = vector.shape_cast %129 : vector<1x16x512xbf16> to vector<16x512xbf16>
    %131 = arith.extf %130 : vector<16x512xbf16> to vector<16x512xf32>
    %132 = arith.truncf %124 : vector<16x128xf32> to vector<16x128xbf16>
    %cst_53 = arith.constant dense<0.000000e+00> : vector<16x512xf32>
    %133 = tpu.matmul %132, %5, %cst_53 {dimension_numbers = #tpu.dot_dimension_numbers<[1], [0], [0], [1], [0, 0, 1, 1], [], []>} : vector<16x128xbf16>, vector<128x512xbf16>, vector<16x512xf32> -> vector<16x512xf32>
    %134 = arith.addf %131, %133 : vector<16x512xf32>
    %135 = vector.extract_strided_slice %134 {offsets = [0, 0], sizes = [16, 128], strides = [1, 1]} : vector<16x512xf32> to vector<16x128xf32>
    %cst_54 = arith.constant 5.000000e-01 : f32
    %136 = vector.broadcast %cst_54 : f32 to vector<16x128xf32>
    %137 = arith.mulf %136, %135 : vector<16x128xf32>
    %138 = math.tanh %137 : vector<16x128xf32>
    %cst_55 = arith.constant 5.000000e-01 : f32
    %139 = vector.broadcast %cst_55 : f32 to vector<16x128xf32>
    %140 = arith.mulf %139, %138 : vector<16x128xf32>
    %cst_56 = arith.constant 5.000000e-01 : f32
    %141 = vector.broadcast %cst_56 : f32 to vector<16x128xf32>
    %142 = arith.addf %140, %141 : vector<16x128xf32>
    %143 = vector.extract_strided_slice %134 {offsets = [0, 128], sizes = [16, 128], strides = [1, 1]} : vector<16x512xf32> to vector<16x128xf32>
    %cst_57 = arith.constant 5.000000e-01 : f32
    %144 = vector.broadcast %cst_57 : f32 to vector<16x128xf32>
    %145 = arith.mulf %144, %143 : vector<16x128xf32>
    %146 = math.tanh %145 : vector<16x128xf32>
    %cst_58 = arith.constant 5.000000e-01 : f32
    %147 = vector.broadcast %cst_58 : f32 to vector<16x128xf32>
    %148 = arith.mulf %147, %146 : vector<16x128xf32>
    %cst_59 = arith.constant 5.000000e-01 : f32
    %149 = vector.broadcast %cst_59 : f32 to vector<16x128xf32>
    %150 = arith.addf %148, %149 : vector<16x128xf32>
    %151 = vector.extract_strided_slice %134 {offsets = [0, 256], sizes = [16, 128], strides = [1, 1]} : vector<16x512xf32> to vector<16x128xf32>
    %152 = math.tanh %151 : vector<16x128xf32>
    %153 = vector.extract_strided_slice %134 {offsets = [0, 384], sizes = [16, 128], strides = [1, 1]} : vector<16x512xf32> to vector<16x128xf32>
    %cst_60 = arith.constant 5.000000e-01 : f32
    %154 = vector.broadcast %cst_60 : f32 to vector<16x128xf32>
    %155 = arith.mulf %154, %153 : vector<16x128xf32>
    %156 = math.tanh %155 : vector<16x128xf32>
    %cst_61 = arith.constant 5.000000e-01 : f32
    %157 = vector.broadcast %cst_61 : f32 to vector<16x128xf32>
    %158 = arith.mulf %157, %156 : vector<16x128xf32>
    %cst_62 = arith.constant 5.000000e-01 : f32
    %159 = vector.broadcast %cst_62 : f32 to vector<16x128xf32>
    %160 = arith.addf %158, %159 : vector<16x128xf32>
    %161 = arith.mulf %150, %122 : vector<16x128xf32>
    %162 = arith.mulf %142, %152 : vector<16x128xf32>
    %163 = arith.addf %161, %162 : vector<16x128xf32>
    %164 = math.tanh %163 : vector<16x128xf32>
    %165 = arith.mulf %160, %164 : vector<16x128xf32>
    %166 = arith.truncf %165 : vector<16x128xf32> to vector<16x128xbf16>
    %c3_63 = arith.constant 3 : index
    %c0_64 = arith.constant 0 : index
    %c0_65 = arith.constant 0 : index
    %167 = vector.load %arg4[%c3_63, %c0_64, %c0_65] : memref<8x16x128xbf16, #tpu.memory_space<vmem>>, vector<1x16x128xbf16>
    %168 = vector.shape_cast %167 : vector<1x16x128xbf16> to vector<16x128xbf16>
    %169 = vector.shape_cast %166 : vector<16x128xbf16> to vector<1x16x128xbf16>
    tpu.vector_store %arg4[%c3_63, %c0_64, %c0_65], %169 {strides = array<i32>} : memref<8x16x128xbf16, #tpu.memory_space<vmem>>, vector<1x16x128xbf16>,
    %c4 = arith.constant 4 : index
    %c0_66 = arith.constant 0 : index
    %c0_67 = arith.constant 0 : index
    %170 = vector.load %arg2[%c4, %c0_66, %c0_67] : memref<8x16x512xbf16, #tpu.memory_space<vmem>>, vector<1x16x512xbf16>
    %171 = vector.shape_cast %170 : vector<1x16x512xbf16> to vector<16x512xbf16>
    %172 = arith.extf %171 : vector<16x512xbf16> to vector<16x512xf32>
    %173 = arith.truncf %165 : vector<16x128xf32> to vector<16x128xbf16>
    %cst_68 = arith.constant dense<0.000000e+00> : vector<16x512xf32>
    %174 = tpu.matmul %173, %5, %cst_68 {dimension_numbers = #tpu.dot_dimension_numbers<[1], [0], [0], [1], [0, 0, 1, 1], [], []>} : vector<16x128xbf16>, vector<128x512xbf16>, vector<16x512xf32> -> vector<16x512xf32>
    %175 = arith.addf %172, %174 : vector<16x512xf32>
    %176 = vector.extract_strided_slice %175 {offsets = [0, 0], sizes = [16, 128], strides = [1, 1]} : vector<16x512xf32> to vector<16x128xf32>
    %cst_69 = arith.constant 5.000000e-01 : f32
    %177 = vector.broadcast %cst_69 : f32 to vector<16x128xf32>
    %178 = arith.mulf %177, %176 : vector<16x128xf32>
    %179 = math.tanh %178 : vector<16x128xf32>
    %cst_70 = arith.constant 5.000000e-01 : f32
    %180 = vector.broadcast %cst_70 : f32 to vector<16x128xf32>
    %181 = arith.mulf %180, %179 : vector<16x128xf32>
    %cst_71 = arith.constant 5.000000e-01 : f32
    %182 = vector.broadcast %cst_71 : f32 to vector<16x128xf32>
    %183 = arith.addf %181, %182 : vector<16x128xf32>
    %184 = vector.extract_strided_slice %175 {offsets = [0, 128], sizes = [16, 128], strides = [1, 1]} : vector<16x512xf32> to vector<16x128xf32>
    %cst_72 = arith.constant 5.000000e-01 : f32
    %185 = vector.broadcast %cst_72 : f32 to vector<16x128xf32>
    %186 = arith.mulf %185, %184 : vector<16x128xf32>
    %187 = math.tanh %186 : vector<16x128xf32>
    %cst_73 = arith.constant 5.000000e-01 : f32
    %188 = vector.broadcast %cst_73 : f32 to vector<16x128xf32>
    %189 = arith.mulf %188, %187 : vector<16x128xf32>
    %cst_74 = arith.constant 5.000000e-01 : f32
    %190 = vector.broadcast %cst_74 : f32 to vector<16x128xf32>
    %191 = arith.addf %189, %190 : vector<16x128xf32>
    %192 = vector.extract_strided_slice %175 {offsets = [0, 256], sizes = [16, 128], strides = [1, 1]} : vector<16x512xf32> to vector<16x128xf32>
    %193 = math.tanh %192 : vector<16x128xf32>
    %194 = vector.extract_strided_slice %175 {offsets = [0, 384], sizes = [16, 128], strides = [1, 1]} : vector<16x512xf32> to vector<16x128xf32>
    %cst_75 = arith.constant 5.000000e-01 : f32
    %195 = vector.broadcast %cst_75 : f32 to vector<16x128xf32>
    %196 = arith.mulf %195, %194 : vector<16x128xf32>
    %197 = math.tanh %196 : vector<16x128xf32>
    %cst_76 = arith.constant 5.000000e-01 : f32
    %198 = vector.broadcast %cst_76 : f32 to vector<16x128xf32>
    %199 = arith.mulf %198, %197 : vector<16x128xf32>
    %cst_77 = arith.constant 5.000000e-01 : f32
    %200 = vector.broadcast %cst_77 : f32 to vector<16x128xf32>
    %201 = arith.addf %199, %200 : vector<16x128xf32>
    %202 = arith.mulf %191, %163 : vector<16x128xf32>
    %203 = arith.mulf %183, %193 : vector<16x128xf32>
    %204 = arith.addf %202, %203 : vector<16x128xf32>
    %205 = math.tanh %204 : vector<16x128xf32>
    %206 = arith.mulf %201, %205 : vector<16x128xf32>
    %207 = arith.truncf %206 : vector<16x128xf32> to vector<16x128xbf16>
    %c4_78 = arith.constant 4 : index
    %c0_79 = arith.constant 0 : index
    %c0_80 = arith.constant 0 : index
    %208 = vector.load %arg4[%c4_78, %c0_79, %c0_80] : memref<8x16x128xbf16, #tpu.memory_space<vmem>>, vector<1x16x128xbf16>
    %209 = vector.shape_cast %208 : vector<1x16x128xbf16> to vector<16x128xbf16>
    %210 = vector.shape_cast %207 : vector<16x128xbf16> to vector<1x16x128xbf16>
    tpu.vector_store %arg4[%c4_78, %c0_79, %c0_80], %210 {strides = array<i32>} : memref<8x16x128xbf16, #tpu.memory_space<vmem>>, vector<1x16x128xbf16>,
    %c5 = arith.constant 5 : index
    %c0_81 = arith.constant 0 : index
    %c0_82 = arith.constant 0 : index
    %211 = vector.load %arg2[%c5, %c0_81, %c0_82] : memref<8x16x512xbf16, #tpu.memory_space<vmem>>, vector<1x16x512xbf16>
    %212 = vector.shape_cast %211 : vector<1x16x512xbf16> to vector<16x512xbf16>
    %213 = arith.extf %212 : vector<16x512xbf16> to vector<16x512xf32>
    %214 = arith.truncf %206 : vector<16x128xf32> to vector<16x128xbf16>
    %cst_83 = arith.constant dense<0.000000e+00> : vector<16x512xf32>
    %215 = tpu.matmul %214, %5, %cst_83 {dimension_numbers = #tpu.dot_dimension_numbers<[1], [0], [0], [1], [0, 0, 1, 1], [], []>} : vector<16x128xbf16>, vector<128x512xbf16>, vector<16x512xf32> -> vector<16x512xf32>
    %216 = arith.addf %213, %215 : vector<16x512xf32>
    %217 = vector.extract_strided_slice %216 {offsets = [0, 0], sizes = [16, 128], strides = [1, 1]} : vector<16x512xf32> to vector<16x128xf32>
    %cst_84 = arith.constant 5.000000e-01 : f32
    %218 = vector.broadcast %cst_84 : f32 to vector<16x128xf32>
    %219 = arith.mulf %218, %217 : vector<16x128xf32>
    %220 = math.tanh %219 : vector<16x128xf32>
    %cst_85 = arith.constant 5.000000e-01 : f32
    %221 = vector.broadcast %cst_85 : f32 to vector<16x128xf32>
    %222 = arith.mulf %221, %220 : vector<16x128xf32>
    %cst_86 = arith.constant 5.000000e-01 : f32
    %223 = vector.broadcast %cst_86 : f32 to vector<16x128xf32>
    %224 = arith.addf %222, %223 : vector<16x128xf32>
    %225 = vector.extract_strided_slice %216 {offsets = [0, 128], sizes = [16, 128], strides = [1, 1]} : vector<16x512xf32> to vector<16x128xf32>
    %cst_87 = arith.constant 5.000000e-01 : f32
    %226 = vector.broadcast %cst_87 : f32 to vector<16x128xf32>
    %227 = arith.mulf %226, %225 : vector<16x128xf32>
    %228 = math.tanh %227 : vector<16x128xf32>
    %cst_88 = arith.constant 5.000000e-01 : f32
    %229 = vector.broadcast %cst_88 : f32 to vector<16x128xf32>
    %230 = arith.mulf %229, %228 : vector<16x128xf32>
    %cst_89 = arith.constant 5.000000e-01 : f32
    %231 = vector.broadcast %cst_89 : f32 to vector<16x128xf32>
    %232 = arith.addf %230, %231 : vector<16x128xf32>
    %233 = vector.extract_strided_slice %216 {offsets = [0, 256], sizes = [16, 128], strides = [1, 1]} : vector<16x512xf32> to vector<16x128xf32>
    %234 = math.tanh %233 : vector<16x128xf32>
    %235 = vector.extract_strided_slice %216 {offsets = [0, 384], sizes = [16, 128], strides = [1, 1]} : vector<16x512xf32> to vector<16x128xf32>
    %cst_90 = arith.constant 5.000000e-01 : f32
    %236 = vector.broadcast %cst_90 : f32 to vector<16x128xf32>
    %237 = arith.mulf %236, %235 : vector<16x128xf32>
    %238 = math.tanh %237 : vector<16x128xf32>
    %cst_91 = arith.constant 5.000000e-01 : f32
    %239 = vector.broadcast %cst_91 : f32 to vector<16x128xf32>
    %240 = arith.mulf %239, %238 : vector<16x128xf32>
    %cst_92 = arith.constant 5.000000e-01 : f32
    %241 = vector.broadcast %cst_92 : f32 to vector<16x128xf32>
    %242 = arith.addf %240, %241 : vector<16x128xf32>
    %243 = arith.mulf %232, %204 : vector<16x128xf32>
    %244 = arith.mulf %224, %234 : vector<16x128xf32>
    %245 = arith.addf %243, %244 : vector<16x128xf32>
    %246 = math.tanh %245 : vector<16x128xf32>
    %247 = arith.mulf %242, %246 : vector<16x128xf32>
    %248 = arith.truncf %247 : vector<16x128xf32> to vector<16x128xbf16>
    %c5_93 = arith.constant 5 : index
    %c0_94 = arith.constant 0 : index
    %c0_95 = arith.constant 0 : index
    %249 = vector.load %arg4[%c5_93, %c0_94, %c0_95] : memref<8x16x128xbf16, #tpu.memory_space<vmem>>, vector<1x16x128xbf16>
    %250 = vector.shape_cast %249 : vector<1x16x128xbf16> to vector<16x128xbf16>
    %251 = vector.shape_cast %248 : vector<16x128xbf16> to vector<1x16x128xbf16>
    tpu.vector_store %arg4[%c5_93, %c0_94, %c0_95], %251 {strides = array<i32>} : memref<8x16x128xbf16, #tpu.memory_space<vmem>>, vector<1x16x128xbf16>,
    %c6 = arith.constant 6 : index
    %c0_96 = arith.constant 0 : index
    %c0_97 = arith.constant 0 : index
    %252 = vector.load %arg2[%c6, %c0_96, %c0_97] : memref<8x16x512xbf16, #tpu.memory_space<vmem>>, vector<1x16x512xbf16>
    %253 = vector.shape_cast %252 : vector<1x16x512xbf16> to vector<16x512xbf16>
    %254 = arith.extf %253 : vector<16x512xbf16> to vector<16x512xf32>
    %255 = arith.truncf %247 : vector<16x128xf32> to vector<16x128xbf16>
    %cst_98 = arith.constant dense<0.000000e+00> : vector<16x512xf32>
    %256 = tpu.matmul %255, %5, %cst_98 {dimension_numbers = #tpu.dot_dimension_numbers<[1], [0], [0], [1], [0, 0, 1, 1], [], []>} : vector<16x128xbf16>, vector<128x512xbf16>, vector<16x512xf32> -> vector<16x512xf32>
    %257 = arith.addf %254, %256 : vector<16x512xf32>
    %258 = vector.extract_strided_slice %257 {offsets = [0, 0], sizes = [16, 128], strides = [1, 1]} : vector<16x512xf32> to vector<16x128xf32>
    %cst_99 = arith.constant 5.000000e-01 : f32
    %259 = vector.broadcast %cst_99 : f32 to vector<16x128xf32>
    %260 = arith.mulf %259, %258 : vector<16x128xf32>
    %261 = math.tanh %260 : vector<16x128xf32>
    %cst_100 = arith.constant 5.000000e-01 : f32
    %262 = vector.broadcast %cst_100 : f32 to vector<16x128xf32>
    %263 = arith.mulf %262, %261 : vector<16x128xf32>
    %cst_101 = arith.constant 5.000000e-01 : f32
    %264 = vector.broadcast %cst_101 : f32 to vector<16x128xf32>
    %265 = arith.addf %263, %264 : vector<16x128xf32>
    %266 = vector.extract_strided_slice %257 {offsets = [0, 128], sizes = [16, 128], strides = [1, 1]} : vector<16x512xf32> to vector<16x128xf32>
    %cst_102 = arith.constant 5.000000e-01 : f32
    %267 = vector.broadcast %cst_102 : f32 to vector<16x128xf32>
    %268 = arith.mulf %267, %266 : vector<16x128xf32>
    %269 = math.tanh %268 : vector<16x128xf32>
    %cst_103 = arith.constant 5.000000e-01 : f32
    %270 = vector.broadcast %cst_103 : f32 to vector<16x128xf32>
    %271 = arith.mulf %270, %269 : vector<16x128xf32>
    %cst_104 = arith.constant 5.000000e-01 : f32
    %272 = vector.broadcast %cst_104 : f32 to vector<16x128xf32>
    %273 = arith.addf %271, %272 : vector<16x128xf32>
    %274 = vector.extract_strided_slice %257 {offsets = [0, 256], sizes = [16, 128], strides = [1, 1]} : vector<16x512xf32> to vector<16x128xf32>
    %275 = math.tanh %274 : vector<16x128xf32>
    %276 = vector.extract_strided_slice %257 {offsets = [0, 384], sizes = [16, 128], strides = [1, 1]} : vector<16x512xf32> to vector<16x128xf32>
    %cst_105 = arith.constant 5.000000e-01 : f32
    %277 = vector.broadcast %cst_105 : f32 to vector<16x128xf32>
    %278 = arith.mulf %277, %276 : vector<16x128xf32>
    %279 = math.tanh %278 : vector<16x128xf32>
    %cst_106 = arith.constant 5.000000e-01 : f32
    %280 = vector.broadcast %cst_106 : f32 to vector<16x128xf32>
    %281 = arith.mulf %280, %279 : vector<16x128xf32>
    %cst_107 = arith.constant 5.000000e-01 : f32
    %282 = vector.broadcast %cst_107 : f32 to vector<16x128xf32>
    %283 = arith.addf %281, %282 : vector<16x128xf32>
    %284 = arith.mulf %273, %245 : vector<16x128xf32>
    %285 = arith.mulf %265, %275 : vector<16x128xf32>
    %286 = arith.addf %284, %285 : vector<16x128xf32>
    %287 = math.tanh %286 : vector<16x128xf32>
    %288 = arith.mulf %283, %287 : vector<16x128xf32>
    %289 = arith.truncf %288 : vector<16x128xf32> to vector<16x128xbf16>
    %c6_108 = arith.constant 6 : index
    %c0_109 = arith.constant 0 : index
    %c0_110 = arith.constant 0 : index
    %290 = vector.load %arg4[%c6_108, %c0_109, %c0_110] : memref<8x16x128xbf16, #tpu.memory_space<vmem>>, vector<1x16x128xbf16>
    %291 = vector.shape_cast %290 : vector<1x16x128xbf16> to vector<16x128xbf16>
    %292 = vector.shape_cast %289 : vector<16x128xbf16> to vector<1x16x128xbf16>
    tpu.vector_store %arg4[%c6_108, %c0_109, %c0_110], %292 {strides = array<i32>} : memref<8x16x128xbf16, #tpu.memory_space<vmem>>, vector<1x16x128xbf16>,
    %c7 = arith.constant 7 : index
    %c0_111 = arith.constant 0 : index
    %c0_112 = arith.constant 0 : index
    %293 = vector.load %arg2[%c7, %c0_111, %c0_112] : memref<8x16x512xbf16, #tpu.memory_space<vmem>>, vector<1x16x512xbf16>
    %294 = vector.shape_cast %293 : vector<1x16x512xbf16> to vector<16x512xbf16>
    %295 = arith.extf %294 : vector<16x512xbf16> to vector<16x512xf32>
    %296 = arith.truncf %288 : vector<16x128xf32> to vector<16x128xbf16>
    %cst_113 = arith.constant dense<0.000000e+00> : vector<16x512xf32>
    %297 = tpu.matmul %296, %5, %cst_113 {dimension_numbers = #tpu.dot_dimension_numbers<[1], [0], [0], [1], [0, 0, 1, 1], [], []>} : vector<16x128xbf16>, vector<128x512xbf16>, vector<16x512xf32> -> vector<16x512xf32>
    %298 = arith.addf %295, %297 : vector<16x512xf32>
    %299 = vector.extract_strided_slice %298 {offsets = [0, 0], sizes = [16, 128], strides = [1, 1]} : vector<16x512xf32> to vector<16x128xf32>
    %cst_114 = arith.constant 5.000000e-01 : f32
    %300 = vector.broadcast %cst_114 : f32 to vector<16x128xf32>
    %301 = arith.mulf %300, %299 : vector<16x128xf32>
    %302 = math.tanh %301 : vector<16x128xf32>
    %cst_115 = arith.constant 5.000000e-01 : f32
    %303 = vector.broadcast %cst_115 : f32 to vector<16x128xf32>
    %304 = arith.mulf %303, %302 : vector<16x128xf32>
    %cst_116 = arith.constant 5.000000e-01 : f32
    %305 = vector.broadcast %cst_116 : f32 to vector<16x128xf32>
    %306 = arith.addf %304, %305 : vector<16x128xf32>
    %307 = vector.extract_strided_slice %298 {offsets = [0, 128], sizes = [16, 128], strides = [1, 1]} : vector<16x512xf32> to vector<16x128xf32>
    %cst_117 = arith.constant 5.000000e-01 : f32
    %308 = vector.broadcast %cst_117 : f32 to vector<16x128xf32>
    %309 = arith.mulf %308, %307 : vector<16x128xf32>
    %310 = math.tanh %309 : vector<16x128xf32>
    %cst_118 = arith.constant 5.000000e-01 : f32
    %311 = vector.broadcast %cst_118 : f32 to vector<16x128xf32>
    %312 = arith.mulf %311, %310 : vector<16x128xf32>
    %cst_119 = arith.constant 5.000000e-01 : f32
    %313 = vector.broadcast %cst_119 : f32 to vector<16x128xf32>
    %314 = arith.addf %312, %313 : vector<16x128xf32>
    %315 = vector.extract_strided_slice %298 {offsets = [0, 256], sizes = [16, 128], strides = [1, 1]} : vector<16x512xf32> to vector<16x128xf32>
    %316 = math.tanh %315 : vector<16x128xf32>
    %317 = vector.extract_strided_slice %298 {offsets = [0, 384], sizes = [16, 128], strides = [1, 1]} : vector<16x512xf32> to vector<16x128xf32>
    %cst_120 = arith.constant 5.000000e-01 : f32
    %318 = vector.broadcast %cst_120 : f32 to vector<16x128xf32>
    %319 = arith.mulf %318, %317 : vector<16x128xf32>
    %320 = math.tanh %319 : vector<16x128xf32>
    %cst_121 = arith.constant 5.000000e-01 : f32
    %321 = vector.broadcast %cst_121 : f32 to vector<16x128xf32>
    %322 = arith.mulf %321, %320 : vector<16x128xf32>
    %cst_122 = arith.constant 5.000000e-01 : f32
    %323 = vector.broadcast %cst_122 : f32 to vector<16x128xf32>
    %324 = arith.addf %322, %323 : vector<16x128xf32>
    %325 = arith.mulf %314, %286 : vector<16x128xf32>
    %326 = arith.mulf %306, %316 : vector<16x128xf32>
    %327 = arith.addf %325, %326 : vector<16x128xf32>
    %328 = math.tanh %327 : vector<16x128xf32>
    %329 = arith.mulf %324, %328 : vector<16x128xf32>
    %330 = arith.truncf %329 : vector<16x128xf32> to vector<16x128xbf16>
    %c7_123 = arith.constant 7 : index
    %c0_124 = arith.constant 0 : index
    %c0_125 = arith.constant 0 : index
    %331 = vector.load %arg4[%c7_123, %c0_124, %c0_125] : memref<8x16x128xbf16, #tpu.memory_space<vmem>>, vector<1x16x128xbf16>
    %332 = vector.shape_cast %331 : vector<1x16x128xbf16> to vector<16x128xbf16>
    %333 = vector.shape_cast %330 : vector<16x128xbf16> to vector<1x16x128xbf16>
    tpu.vector_store %arg4[%c7_123, %c0_124, %c0_125], %333 {strides = array<i32>} : memref<8x16x128xbf16, #tpu.memory_space<vmem>>, vector<1x16x128xbf16>,
    %c0_126 = arith.constant 0 : index
    %c0_127 = arith.constant 0 : index
    %334 = vector.load %arg6[%c0_126, %c0_127] : memref<16x128xf32, #tpu.memory_space<vmem>>, vector<16x128xf32>
    tpu.vector_store %arg6[%c0_126, %c0_127], %329 {strides = array<i32>} : memref<16x128xf32, #tpu.memory_space<vmem>>, vector<16x128xf32>,
    %c0_128 = arith.constant 0 : index
    %c0_129 = arith.constant 0 : index
    %335 = vector.load %arg7[%c0_128, %c0_129] : memref<16x128xf32, #tpu.memory_space<vmem>>, vector<16x128xf32>
    tpu.vector_store %arg7[%c0_128, %c0_129], %327 {strides = array<i32>} : memref<16x128xf32, #tpu.memory_space<vmem>>, vector<16x128xf32>,
    return
  }
  func.func @transform_0(%arg0: i32, %arg1: i32) -> (i32, i32, i32) {
    %c0_i32 = arith.constant 0 : i32
    %c0_i32_0 = arith.constant 0 : i32
    return %arg1, %arg0, %c0_i32 : i32, i32, i32
  }
  func.func @transform_2(%arg0: i32, %arg1: i32) -> (i32, i32, i32) {
    %c0_i32 = arith.constant 0 : i32
    %c0_i32_0 = arith.constant 0 : i32
    return %arg1, %arg0, %c0_i32 : i32, i32, i32
  }
}

</mosaic_0001>

<bundles_post_ra>
// kernel: tpu_custom_call.1
= control target key start
LH: loop header
LB: loop body
LE: loop exit
PB: predicated region body
PF: predicated region fallthrough
CT: control target
= control target key end

     0   :  { %7 = vsyncpa [#allocation7], 0  ;;  %s2411_s0 = inlined_call_operand.hbm [shape: bf16[8,16,512], index: 0, kind: input, shape index: {}]   ;;  %s2412_s1 = inlined_call_operand.hbm [shape: bf16[128,512], index: 1, kind: input, shape index: {}]   ;;  %s2413_s2 = inlined_call_operand.hbm [shape: bf16[8,16,128], index: 2, kind: output, shape index: {}]  }
   0x1   :  { %8 = vsyncpa [#allocation8], 0  ;;  %s1922_s9 = smov [#allocation6]  }
   0x2   :  { %s14_s10 = sshll.u32 %s1922_s9, 4  ;;  %s15_s10 = int_to_ptr.vmem [resolvable:$true] %s14_s10 }
   0x3   :  { %s1864_s11 = scalar_lea.vmem %s15_s10, 4096  ;;  %p1869_p1 = scmp.lt.s32.totalorder %s15_s10, %s15_s10 }
   0x4   :  { %p1865_p0 = scmp.ne.s32.totalorder %s15_s10, %s1864_s11  ;;  %p1870_p2 = scmp.lt.s32.totalorder %s1864_s11, %s1864_s11 }
   0x6   :  { %p1871_p3 = por %p1870_p2, %p1869_p1 }
   0x8   :  { %p1872_p4 = pnand %p1871_p3, %p1865_p0 }
   0xa   :  { %1875 = shalt.err (!%p1872_p4)
}
   0xb   :  { %s1923_s12 = smov 256   ;;  %s1924_s13 = smov 16  }
   0xc   :  { %20 = dma.hbm_to_vmem [thread:$0]  %s2411_s0, 4096, %s15_s10, [#allocation7], %s1923_s12, %s1923_s12, %s1924_s13  }
   0xd   :  { %1916 = dma.done.wait [#allocation7], 4096  }
   0xe   :  { %1917 = vsyncadd [#allocation7], 4294963200  ;;  %s1925_s16 = smov [#allocation2]  }
   0xf   :  { %s40_s17 = sshll.u32 %s1925_s16, 4  ;;  %s41_s17 = int_to_ptr.vmem [resolvable:$true] %s40_s17 }
  0x10   :  { %s1884_s18 = scalar_lea.vmem %s41_s17, 4096  ;;  %p1889_p6 = scmp.lt.s32.totalorder %s41_s17, %s41_s17 }
  0x11   :  { %p1885_p5 = scmp.ne.s32.totalorder %s41_s17, %s1884_s18  ;;  %p1890_p7 = scmp.lt.s32.totalorder %s1884_s18, %s1884_s18 }
  0x13   :  { %p1891_p8 = por %p1890_p7, %p1889_p6 }
  0x15   :  { %p1892_p9 = pnand %p1891_p8, %p1885_p5 }
  0x17   :  { %1895 = shalt.err (!%p1892_p9)  }
  0x18   :  { %43 = dma.hbm_to_vmem [thread:$0]  %s2412_s1, 4096, %s41_s17, [#allocation5] }
  0x19   :  { %1918 = dma.done.wait [#allocation5], 4096 }
  0x1a   :  { %1919 = vsyncadd [#allocation5], 4294963200  ;;  %v1926_v0 = vmov 0   ;;  %v1954_v1 = vld [vmem:[#allocation2 + $0xe4] ss:$16 sps:$4 sm:$0xff]   ;;  %v1927_v33 = vmov 0.0|0.0  }
  0x1b   :  { %289 = vmatprep.mubr.bf16.mxu0 %v1926_v0  ;;  %332 = vmatprep.mubr.bf16.mxu1 %v1926_v0  ;;  %v1956_v2 = vld [vmem:[#allocation2 + $0xe0] ss:$16 sps:$4 sm:$0xff]   ;;  %v1959_v3 = vld [vmem:[#allocation2 + $0xec] ss:$16 sps:$4 sm:$0xff]   ;;  %v1961_v4 = vld [vmem:[#allocation2 + $0xe8] ss:$16 sps:$4 sm:$0xff]  }
  0x1c   :  { %257 = vmatprep.subr.bf16.mxu0 %v1954_v1  ;;  %v1964_v5 = vld [vmem:[#allocation2 + $0xc4] ss:$16 sps:$4 sm:$0xff]   ;;  %v1966_v6 = vld [vmem:[#allocation2 + $0xc0] ss:$16 sps:$4 sm:$0xff]   ;;  %300 = vmatprep.subr.bf16.mxu1 %v1959_v3  ;;  %v1969_v7 = vld [vmem:[#allocation2 + $0xcc] ss:$16 sps:$4 sm:$0xff]  }
  0x1d   :  { %258 = vmatpush1.bf16.msra.mxu0 %v1956_v2  ;;  %301 = vmatpush1.bf16.msra.mxu1 %v1961_v4  ;;  %v1973_v8 = vld [vmem:[#allocation2 + $0xc8] ss:$16 sps:$4 sm:$0xff]   ;;  %v1976_v9 = vld [vmem:[#allocation2 + $0xa4] ss:$16 sps:$4 sm:$0xff]   ;;  %v1979_v10 = vld [vmem:[#allocation2 + $0xa0] ss:$16 sps:$4 sm:$0xff]  }
  0x1e   :  { %259 = vmatprep.subr.bf16.mxu0 %v1964_v5  ;;  %302 = vmatprep.subr.bf16.mxu1 %v1969_v7  ;;  %v1981_v11 = vld [vmem:[#allocation2 + $0xac] ss:$16 sps:$4 sm:$0xff]   ;;  %v1984_v12 = vld [vmem:[#allocation2 + $0x84] ss:$16 sps:$4 sm:$0xff]   ;;  %v1987_v13 = vld [vmem:[#allocation2 + $0xa8] ss:$16 sps:$4 sm:$0xff]  }
  0x1f   :  { %v1990_v14 = vld [vmem:[#allocation2 + $0x8c] ss:$16 sps:$4 sm:$0xff]   ;;  %v1993_v15 = vld [vmem:[#allocation2 + $0x80] ss:$16 sps:$4 sm:$0xff]   ;;  %v1996_v16 = vld [vmem:[#allocation2 + $0x64] ss:$16 sps:$4 sm:$0xff]  }
  0x20   :  { %v1999_v17 = vld [vmem:[#allocation2 + $0x88] ss:$16 sps:$4 sm:$0xff]   ;;  %v2002_v18 = vld [vmem:[#allocation2 + $0x6c] ss:$16 sps:$4 sm:$0xff]   ;;  %v2005_v19 = vld [vmem:[#allocation2 + $0x60] ss:$16 sps:$4 sm:$0xff]  }
  0x21   :  { %260 = vmatpush1.bf16.msra.mxu0 %v1966_v6  ;;  %303 = vmatpush1.bf16.msra.mxu1 %v1973_v8  ;;  %v2008_v20 = vld [vmem:[#allocation2 + $0x44] ss:$16 sps:$4 sm:$0xff]   ;;  %v2011_v21 = vld [vmem:[#allocation2 + $0x68] ss:$16 sps:$4 sm:$0xff]   ;;  %v2014_v22 = vld [vmem:[#allocation2 + $0x4c] ss:$16 sps:$4 sm:$0xff]  }
  0x22   :  { %261 = vmatprep.subr.bf16.mxu0 %v1976_v9  ;;  %304 = vmatprep.subr.bf16.mxu1 %v1981_v11  ;;  %v2017_v23 = vld [vmem:[#allocation2 + $0x40] ss:$16 sps:$4 sm:$0xff]   ;;  %v2020_v24 = vld [vmem:[#allocation2 + $0x24] ss:$16 sps:$4 sm:$0xff]   ;;  %v2023_v25 = vld [vmem:[#allocation2 + $0x48] ss:$16 sps:$4 sm:$0xff]  }
  0x23   :  { %v2026_v26 = vld [vmem:[#allocation2 + $0x2c] ss:$16 sps:$4 sm:$0xff]   ;;  %v2029_v27 = vld [vmem:[#allocation2 + $0x20] ss:$16 sps:$4 sm:$0xff]   ;;  %v2032_v28 = vld [vmem:[#allocation2 + $0x4] ss:$16 sps:$4 sm:$0xff]  }
  0x24   :  { %v2035_v29 = vld [vmem:[#allocation2 + $0x28] ss:$16 sps:$4 sm:$0xff]   ;;  %v2038_v30 = vld [vmem:[#allocation2 + $0xc] ss:$16 sps:$4 sm:$0xff]   ;;  %v2041_v31 = vld [vmem:[#allocation2] ss:$16 sps:$4 sm:$0xff]  }
  0x25   :  { %262 = vmatpush1.bf16.msra.mxu0 %v1979_v10  ;;  %305 = vmatpush1.bf16.msra.mxu1 %v1987_v13  ;;  %v2045_v32 = vld [vmem:[#allocation2 + $0x8] ss:$16 sps:$4 sm:$0xff]   ;;  %v84_v34 = vld [vmem:[#allocation6] sm:$0xff]  ;;  %v86_v37 = vld [vmem:[#allocation6 + $0x10] sm:$0xff]  ;;  %s1928_s0 = smov [#allocation9]  }
  0x26   :  { %263 = vmatprep.subr.bf16.mxu0 %v1984_v12  ;;  %306 = vmatprep.subr.bf16.mxu1 %v1990_v14  ;;  %v88_v35 = vunpack.c.l.bf16 %v84_v34  ;;  %v85_v36 = vld [vmem:[#allocation6 + $0x8] sm:$0xff]  ;;  %v89_v38 = vunpack.c.h.bf16 %v84_v34  ;;  %v92_v42 = vunpack.c.l.bf16 %v86_v37  ;;  %v93_v47 = vunpack.c.h.bf16 %v86_v37  ;;  %v87_v50 = vld [vmem:[#allocation6 + $0x18] sm:$0xff]  ;;  %s1484_s1 = sshll.u32 %s1928_s0, 4  ;;  %s1485_s1 = int_to_ptr.vmem [resolvable:$true] %s1484_s1 }
  0x27   :  { %v90_v40 = vunpack.c.l.bf16 %v85_v36  ;;  %v94_v57 = vunpack.c.l.bf16 %v87_v50  ;;  %v91_v60 = vunpack.c.h.bf16 %v85_v36  ;;  %v95_v62 = vunpack.c.h.bf16 %v87_v50  ;;  %s1896_s21 = scalar_lea.vmem %s1485_s1, 1024  ;;  %p1901_p11 = scmp.lt.s32.totalorder %s1485_s1, %s1485_s1 }
  0x28   :  { %p1897_p10 = scmp.ne.s32.totalorder %s1485_s1, %s1896_s21  ;;  %p1902_p12 = scmp.lt.s32.totalorder %s1896_s21, %s1896_s21 }
  0x29   :  { %264 = vmatpush1.bf16.msra.mxu0 %v1993_v15  ;;  %307 = vmatpush1.bf16.msra.mxu1 %v1999_v17 }
  0x2a   :  { %265 = vmatprep.subr.bf16.mxu0 %v1996_v16  ;;  %308 = vmatprep.subr.bf16.mxu1 %v2002_v18  ;;  %p1903_p13 = por %p1902_p12, %p1901_p11 }
  0x2c   :  { %p1904_p0 = pnand %p1903_p13, %p1897_p10 }
  0x2d   :  { %266 = vmatpush1.bf16.msra.mxu0 %v2005_v19  ;;  %309 = vmatpush1.bf16.msra.mxu1 %v2011_v21 }
  0x2e   :  { %267 = vmatprep.subr.bf16.mxu0 %v2008_v20  ;;  %310 = vmatprep.subr.bf16.mxu1 %v2014_v22 }
  0x31   :  { %268 = vmatpush1.bf16.msra.mxu0 %v2017_v23  ;;  %311 = vmatpush1.bf16.msra.mxu1 %v2023_v25 }
  0x32   :  { %269 = vmatprep.subr.bf16.mxu0 %v2020_v24  ;;  %312 = vmatprep.subr.bf16.mxu1 %v2026_v26 }
  0x35   :  { %270 = vmatpush1.bf16.msra.mxu0 %v2029_v27  ;;  %313 = vmatpush1.bf16.msra.mxu1 %v2035_v29 }
  0x36   :  { %271 = vmatprep.subr.bf16.mxu0 %v2032_v28  ;;  %314 = vmatprep.subr.bf16.mxu1 %v2038_v30 }
  0x39   :  { %272 = vmatpush1.bf16.msra.mxu0 %v2041_v31  ;;  %315 = vmatpush1.bf16.msra.mxu1 %v2045_v32 }
  0x3a   :  { %410 = vmatprep.subr.bf16.mxu0 %v1954_v1  ;;  %453 = vmatprep.subr.bf16.mxu1 %v1959_v3 }
  0x3c   :  { %290 = vmatmul.mubr.bf16.vlgmr.msra.gmra.mxu0 %v1927_v33  ;;  %333 = vmatmul.mubr.bf16.vlgmr.msra.gmra.mxu1 %v1927_v33 }
  0x3d   :  { %411 = vmatpush1.bf16.msra.mxu0 %v1956_v2  ;;  %442 = vmatprep.mubr.bf16.mxu0 %v1926_v0 }
  0x3e   :  { %412 = vmatprep.subr.bf16.mxu0 %v1964_v5  ;;  %454 = vmatpush1.bf16.msra.mxu1 %v1961_v4 }
  0x3f   :  { %485 = vmatprep.mubr.bf16.mxu1 %v1926_v0  ;;  %455 = vmatprep.subr.bf16.mxu1 %v1969_v7 }
  0x41   :  { %413 = vmatpush1.bf16.msra.mxu0 %v1966_v6 }
  0x42   :  { %414 = vmatprep.subr.bf16.mxu0 %v1976_v9  ;;  %456 = vmatpush1.bf16.msra.mxu1 %v1973_v8 }
  0x43   :  { %457 = vmatprep.subr.bf16.mxu1 %v1981_v11 }
  0x45   :  { %415 = vmatpush1.bf16.msra.mxu0 %v1979_v10 }
  0x46   :  { %416 = vmatprep.subr.bf16.mxu0 %v1984_v12  ;;  %458 = vmatpush1.bf16.msra.mxu1 %v1987_v13 }
  0x47   :  { %459 = vmatprep.subr.bf16.mxu1 %v1990_v14 }
  0x49   :  { %417 = vmatpush1.bf16.msra.mxu0 %v1993_v15 }
  0x4a   :  { %418 = vmatprep.subr.bf16.mxu0 %v1996_v16  ;;  %460 = vmatpush1.bf16.msra.mxu1 %v1999_v17 }
  0x4b   :  { %461 = vmatprep.subr.bf16.mxu1 %v2002_v18 }
  0x4d   :  { %419 = vmatpush1.bf16.msra.mxu0 %v2005_v19 }
  0x4e   :  { %420 = vmatprep.subr.bf16.mxu0 %v2008_v20  ;;  %462 = vmatpush1.bf16.msra.mxu1 %v2011_v21 }
  0x4f   :  { %463 = vmatprep.subr.bf16.mxu1 %v2014_v22 }
  0x51   :  { %421 = vmatpush1.bf16.msra.mxu0 %v2017_v23 }
  0x52   :  { %422 = vmatprep.subr.bf16.mxu0 %v2020_v24  ;;  %464 = vmatpush1.bf16.msra.mxu1 %v2023_v25 }
  0x53   :  { %465 = vmatprep.subr.bf16.mxu1 %v2026_v26 }
  0x55   :  { %423 = vmatpush1.bf16.msra.mxu0 %v2029_v27 }
  0x56   :  { %424 = vmatprep.subr.bf16.mxu0 %v2032_v28  ;;  %466 = vmatpush1.bf16.msra.mxu1 %v2035_v29 }
  0x57   :  { %467 = vmatprep.subr.bf16.mxu1 %v2038_v30 }
  0x59   :  { %425 = vmatpush1.bf16.msra.mxu0 %v2041_v31 }
  0x5a   :  { %564 = vmatprep.subr.bf16.mxu0 %v1954_v1  ;;  %468 = vmatpush1.bf16.msra.mxu1 %v2045_v32 }
  0x5b   :  { %607 = vmatprep.subr.bf16.mxu1 %v1959_v3 }
  0xfc   :  { %v291_v39 = vpop.f32.mrf.mxu0  ;;  %v334_v44 = vpop.f32.mrf.mxu1 }
  0xfd   :  { %v343_v41 = vadd.f32 %v291_v39, %v88_v35  ;;  %v345_v48 = vadd.f32 %v334_v44, %v90_v40 }
  0xfe   :  { %v293_v43 = vpop.f32.mrf.mxu0  ;;  %v336_v53 = vpop.f32.mrf.mxu1 }
  0xff   :  { %v351_v45 = vmul.f32 0.5, %v343_v41  ;;  %v344_v46 = vadd.f32 %v293_v43, %v89_v38  ;;  %v346_v33 = vadd.f32 %v336_v53, %v91_v60 }
 0x100   :  { %v295_v49 = vpop.f32.mrf.mxu0  ;;  %v338_v59 = vpop.f32.mrf.mxu1 }
 0x101   :  { %1664 = vtanh.f32 %v351_v45  ;;  %v359_v51 = vmul.f32 0.5, %v344_v46  ;;  %v347_v52 = vadd.f32 %v295_v49, %v92_v42  ;;  %v349_v61 = vadd.f32 %v338_v59, %v94_v57 }
 0x102   :  { %v297_v54 = vpop.f32.mrf.mxu0  ;;  %v340_v63 = vpop.f32.mrf.mxu1  ;;  %v369_v38 = vmul.f32 0.5, %v346_v33 }
 0x103   :  { %1666 = vtanh.f32 %v359_v51  ;;  %v352_v55 = vmul.f32 0.5, %v347_v52  ;;  %v348_v56 = vadd.f32 %v297_v54, %v93_v47  ;;  %v350_v34 = vadd.f32 %v340_v63, %v95_v62 }
 0x104   :  { %1668 = vtanh.f32 %v345_v48 }
 0x105   :  { %1670 = vtanh.f32 %v352_v55  ;;  %v360_v58 = vmul.f32 0.5, %v348_v56  ;;  %v370_v40 = vmul.f32 0.5, %v350_v34 }
 0x107   :  { %1672 = vtanh.f32 %v360_v58 }
 0x108   :  { %1674 = vtanh.f32 %v349_v61 }
 0x109   :  { %1676 = vtanh.f32 %v369_v38  ;;  %v398_v38 = vld [vmem:[#allocation6 + $0x20] sm:$0xff] }
 0x10a   :  { %1678 = vtanh.f32 %v370_v40  ;;  %v400_v40 = vld [vmem:[#allocation6 + $0x30] sm:$0xff] }
 0x10e   :  { %v1665_v35 = vpop.eup %1664 }
 0x10f   :  { %v355_v37 = vmul.f32 0.5, %v1665_v35 }
 0x110   :  { %v1667_v39 = vpop.eup %1666 }
 0x111   :  { %v1669_v41 = vpop.eup %1668  ;;  %v357_v42 = vadd.f32 0.5, %v355_v37  ;;  %v363_v43 = vmul.f32 0.5, %v1667_v39  ;;  %v402_v39 = vunpack.c.l.bf16 %v398_v38 }
 0x112   :  { %v1671_v44 = vpop.eup %1670 }
 0x113   :  { %v365_v45 = vadd.f32 0.5, %v363_v43  ;;  %v356_v46 = vmul.f32 0.5, %v1671_v44  ;;  %v379_v48 = vmul.f32 %v1669_v41, %v357_v42  ;;  %v399_v41 = vld [vmem:[#allocation6 + $0x28] sm:$0xff]  ;;  %v403_v42 = vunpack.c.h.bf16 %v398_v38 }
 0x114   :  { %v1673_v36 = vpop.eup %1672 }
 0x115   :  { %v377_v47 = vmul.f32 0.0, %v365_v45  ;;  %v358_v49 = vadd.f32 0.5, %v356_v46  ;;  %v364_v50 = vmul.f32 0.5, %v1673_v36  ;;  %v1675_v53 = vpop.eup %1674  ;;  %v406_v46 = vunpack.c.l.bf16 %v400_v40 }
 0x116   :  { %v1677_v57 = vpop.eup %1676  ;;  %v404_v36 = vunpack.c.l.bf16 %v399_v41 }
 0x117   :  { %v2086_v51 = vadd.f32 %v379_v48, %v377_v47  ;;  %v366_v52 = vadd.f32 0.5, %v364_v50  ;;  %v380_v55 = vmul.f32 %v1675_v53, %v358_v49  ;;  %v1679_v58 = vpop.eup %1678  ;;  %v373_v59 = vmul.f32 0.5, %v1677_v57 }
 0x118   :  { %v374_v60 = vmul.f32 0.5, %v1679_v58  ;;  %v407_v50 = vunpack.c.h.bf16 %v400_v40 }
 0x119   :  { %v378_v54 = vmul.f32 0.0, %v366_v52  ;;  %1680 = vtanh.f32 %v2086_v51  ;;  %v375_v62 = vadd.f32 0.5, %v373_v59 }
 0x11a   :  { %v376_v63 = vadd.f32 0.5, %v374_v60 }
 0x11b   :  { %v2089_v56 = vadd.f32 %v380_v55, %v378_v54  ;;  %v401_v54 = vld [vmem:[#allocation6 + $0x38] sm:$0xff] }
 0x11d   :  { %1682 = vtanh.f32 %v2089_v56 }
 0x126   :  { %v1681_v61 = vpop.eup %1680 }
 0x127   :  { %v385_v34 = vmul.f32 %v1681_v61, %v375_v62  ;;  %v408_v61 = vunpack.c.l.bf16 %v401_v54 }
 0x12a   :  { %v1683_v33 = vpop.eup %1682 }
 0x12b   :  { %v386_v35 = vmul.f32 %v1683_v33, %v376_v63 }
 0x12d   :  { %v387_v37 = vpack.c.bf16 %v386_v35, %v385_v34  ;;  %v405_v34 = vunpack.c.h.bf16 %v399_v41 }
 0x12f   :  { %1571 = vst [vmem:[#allocation9] sm:$0xff] %v387_v37   ;;  %443 = vmatmul.mubr.bf16.vlgmr.msra.gmra.mxu0 %v387_v37  ;;  %486 = vmatmul.mubr.bf16.vlgmr.msra.gmra.mxu1 %v387_v37  ;;  %v409_v37 = vunpack.c.h.bf16 %v401_v54 }
 0x130   :  { %565 = vmatpush1.bf16.msra.mxu0 %v1956_v2  ;;  %608 = vmatpush1.bf16.msra.mxu1 %v1961_v4 }
 0x131   :  { %566 = vmatprep.subr.bf16.mxu0 %v1964_v5  ;;  %609 = vmatprep.subr.bf16.mxu1 %v1969_v7 }
 0x132   :  { %596 = vmatprep.mubr.bf16.mxu0 %v1926_v0  ;;  %639 = vmatprep.mubr.bf16.mxu1 %v1926_v0 }
 0x134   :  { %567 = vmatpush1.bf16.msra.mxu0 %v1966_v6  ;;  %610 = vmatpush1.bf16.msra.mxu1 %v1973_v8 }
 0x135   :  { %568 = vmatprep.subr.bf16.mxu0 %v1976_v9  ;;  %611 = vmatprep.subr.bf16.mxu1 %v1981_v11 }
 0x138   :  { %569 = vmatpush1.bf16.msra.mxu0 %v1979_v10  ;;  %612 = vmatpush1.bf16.msra.mxu1 %v1987_v13 }
 0x139   :  { %570 = vmatprep.subr.bf16.mxu0 %v1984_v12  ;;  %613 = vmatprep.subr.bf16.mxu1 %v1990_v14 }
 0x13c   :  { %571 = vmatpush1.bf16.msra.mxu0 %v1993_v15  ;;  %614 = vmatpush1.bf16.msra.mxu1 %v1999_v17 }
 0x13d   :  { %572 = vmatprep.subr.bf16.mxu0 %v1996_v16  ;;  %615 = vmatprep.subr.bf16.mxu1 %v2002_v18 }
 0x140   :  { %573 = vmatpush1.bf16.msra.mxu0 %v2005_v19  ;;  %616 = vmatpush1.bf16.msra.mxu1 %v2011_v21 }
 0x141   :  { %574 = vmatprep.subr.bf16.mxu0 %v2008_v20  ;;  %617 = vmatprep.subr.bf16.mxu1 %v2014_v22 }
 0x144   :  { %575 = vmatpush1.bf16.msra.mxu0 %v2017_v23  ;;  %618 = vmatpush1.bf16.msra.mxu1 %v2023_v25 }
 0x145   :  { %576 = vmatprep.subr.bf16.mxu0 %v2020_v24  ;;  %619 = vmatprep.subr.bf16.mxu1 %v2026_v26 }
 0x148   :  { %577 = vmatpush1.bf16.msra.mxu0 %v2029_v27  ;;  %620 = vmatpush1.bf16.msra.mxu1 %v2035_v29 }
 0x149   :  { %578 = vmatprep.subr.bf16.mxu0 %v2032_v28  ;;  %621 = vmatprep.subr.bf16.mxu1 %v2038_v30 }
 0x14c   :  { %579 = vmatpush1.bf16.msra.mxu0 %v2041_v31  ;;  %622 = vmatpush1.bf16.msra.mxu1 %v2045_v32 }
 0x14d   :  { %718 = vmatprep.subr.bf16.mxu0 %v1954_v1  ;;  %761 = vmatprep.subr.bf16.mxu1 %v1959_v3 }
 0x1ef   :  { %v444_v43 = vpop.f32.mrf.mxu0  ;;  %v487_v44 = vpop.f32.mrf.mxu1 }
 0x1f0   :  { %v496_v45 = vadd.f32 %v444_v43, %v402_v39  ;;  %v498_v58 = vadd.f32 %v487_v44, %v404_v36 }
 0x1f1   :  { %v446_v47 = vpop.f32.mrf.mxu0  ;;  %v489_v52 = vpop.f32.mrf.mxu1 }
 0x1f2   :  { %v504_v48 = vmul.f32 0.5, %v496_v45  ;;  %v497_v49 = vadd.f32 %v446_v47, %v403_v42  ;;  %v499_v39 = vadd.f32 %v489_v52, %v405_v34 }
 0x1f3   :  { %v448_v53 = vpop.f32.mrf.mxu0  ;;  %v491_v63 = vpop.f32.mrf.mxu1 }
 0x1f4   :  { %1684 = vtanh.f32 %v504_v48  ;;  %v512_v55 = vmul.f32 0.5, %v497_v49  ;;  %v500_v57 = vadd.f32 %v448_v53, %v406_v46  ;;  %v502_v35 = vadd.f32 %v491_v63, %v408_v61 }
 0x1f5   :  { %v450_v59 = vpop.f32.mrf.mxu0  ;;  %v493_v38 = vpop.f32.mrf.mxu1  ;;  %v522_v44 = vmul.f32 0.5, %v499_v39 }
 0x1f6   :  { %1686 = vtanh.f32 %v512_v55  ;;  %v505_v60 = vmul.f32 0.5, %v500_v57  ;;  %v501_v62 = vadd.f32 %v450_v59, %v407_v50  ;;  %v503_v40 = vadd.f32 %v493_v38, %v409_v37 }
 0x1f8   :  { %1688 = vtanh.f32 %v505_v60  ;;  %v513_v33 = vmul.f32 0.5, %v501_v62  ;;  %v523_v46 = vmul.f32 0.5, %v503_v40 }
 0x1f9   :  { %1690 = vtanh.f32 %v498_v58 }
 0x1fa   :  { %1692 = vtanh.f32 %v513_v33 }
 0x1fb   :  { %1694 = vtanh.f32 %v502_v35 }
 0x1fc   :  { %1696 = vtanh.f32 %v522_v44 }
 0x1fd   :  { %1698 = vtanh.f32 %v523_v46  ;;  %v554_v46 = vld [vmem:[#allocation6 + $0x50] sm:$0xff] }
 0x201   :  { %v1685_v42 = vpop.eup %1684 }
 0x202   :  { %v508_v43 = vmul.f32 0.5, %v1685_v42 }
 0x203   :  { %v1687_v45 = vpop.eup %1686 }
 0x204   :  { %v510_v36 = vadd.f32 0.5, %v508_v43  ;;  %v516_v47 = vmul.f32 0.5, %v1687_v45 }
 0x205   :  { %v1689_v48 = vpop.eup %1688 }
 0x206   :  { %v1691_v49 = vpop.eup %1690  ;;  %v518_v50 = vadd.f32 0.5, %v516_v47  ;;  %v509_v53 = vmul.f32 0.5, %v1689_v48 }
 0x207   :  { %v1693_v41 = vpop.eup %1692  ;;  %v532_v55 = vmul.f32 %v1691_v49, %v510_v36  ;;  %v553_v36 = vld [vmem:[#allocation6 + $0x48] sm:$0xff] }
 0x208   :  { %v530_v54 = vmul.f32 %v518_v50, %v2086_v51  ;;  %v511_v52 = vadd.f32 0.5, %v509_v53  ;;  %v517_v57 = vmul.f32 0.5, %v1693_v41  ;;  %v1695_v60 = vpop.eup %1694  ;;  %v560_v53 = vunpack.c.l.bf16 %v554_v46 }
 0x209   :  { %v1697_v33 = vpop.eup %1696  ;;  %v558_v41 = vunpack.c.l.bf16 %v553_v36 }
 0x20a   :  { %v2127_v58 = vadd.f32 %v532_v55, %v530_v54  ;;  %v519_v59 = vadd.f32 0.5, %v517_v57  ;;  %v533_v62 = vmul.f32 %v1695_v60, %v511_v52  ;;  %v1699_v34 = vpop.eup %1698  ;;  %v526_v35 = vmul.f32 0.5, %v1697_v33 }
 0x20b   :  { %v527_v51 = vmul.f32 0.5, %v1699_v34  ;;  %v561_v57 = vunpack.c.h.bf16 %v554_v46 }
 0x20c   :  { %v531_v61 = vmul.f32 %v519_v59, %v2089_v56  ;;  %1700 = vtanh.f32 %v2127_v58  ;;  %v528_v38 = vadd.f32 0.5, %v526_v35  ;;  %v552_v56 = vld [vmem:[#allocation6 + $0x40] sm:$0xff] }
 0x20d   :  { %v529_v39 = vadd.f32 0.5, %v527_v51  ;;  %v556_v45 = vunpack.c.l.bf16 %v552_v56  ;;  %v557_v47 = vunpack.c.h.bf16 %v552_v56 }
 0x20e   :  { %v2131_v63 = vadd.f32 %v533_v62, %v531_v61  ;;  %v555_v61 = vld [vmem:[#allocation6 + $0x58] sm:$0xff] }
 0x210   :  { %1702 = vtanh.f32 %v2131_v63 }
 0x219   :  { %v1701_v37 = vpop.eup %1700 }
 0x21a   :  { %v538_v42 = vmul.f32 %v1701_v37, %v528_v38  ;;  %v562_v37 = vunpack.c.l.bf16 %v555_v61 }
 0x21d   :  { %v1703_v40 = vpop.eup %1702 }
 0x21e   :  { %v539_v43 = vmul.f32 %v1703_v40, %v529_v39 }
 0x220   :  { %v540_v44 = vpack.c.bf16 %v539_v43, %v538_v42  ;;  %v559_v42 = vunpack.c.h.bf16 %v553_v36 }
 0x222   :  { %1576 = vst [vmem:[#allocation9 + $0x8] sm:$0xff] %v540_v44   ;;  %597 = vmatmul.mubr.bf16.vlgmr.msra.gmra.mxu0 %v540_v44  ;;  %640 = vmatmul.mubr.bf16.vlgmr.msra.gmra.mxu1 %v540_v44  ;;  %v563_v44 = vunpack.c.h.bf16 %v555_v61 }
 0x223   :  { %719 = vmatpush1.bf16.msra.mxu0 %v1956_v2  ;;  %762 = vmatpush1.bf16.msra.mxu1 %v1961_v4 }
 0x224   :  { %720 = vmatprep.subr.bf16.mxu0 %v1964_v5  ;;  %763 = vmatprep.subr.bf16.mxu1 %v1969_v7 }
 0x225   :  { %750 = vmatprep.mubr.bf16.mxu0 %v1926_v0  ;;  %793 = vmatprep.mubr.bf16.mxu1 %v1926_v0 }
 0x227   :  { %721 = vmatpush1.bf16.msra.mxu0 %v1966_v6  ;;  %764 = vmatpush1.bf16.msra.mxu1 %v1973_v8 }
 0x228   :  { %722 = vmatprep.subr.bf16.mxu0 %v1976_v9  ;;  %765 = vmatprep.subr.bf16.mxu1 %v1981_v11 }
 0x22b   :  { %723 = vmatpush1.bf16.msra.mxu0 %v1979_v10  ;;  %766 = vmatpush1.bf16.msra.mxu1 %v1987_v13 }
 0x22c   :  { %724 = vmatprep.subr.bf16.mxu0 %v1984_v12  ;;  %767 = vmatprep.subr.bf16.mxu1 %v1990_v14 }
 0x22f   :  { %725 = vmatpush1.bf16.msra.mxu0 %v1993_v15  ;;  %768 = vmatpush1.bf16.msra.mxu1 %v1999_v17 }
 0x230   :  { %726 = vmatprep.subr.bf16.mxu0 %v1996_v16  ;;  %769 = vmatprep.subr.bf16.mxu1 %v2002_v18 }
 0x233   :  { %727 = vmatpush1.bf16.msra.mxu0 %v2005_v19  ;;  %770 = vmatpush1.bf16.msra.mxu1 %v2011_v21 }
 0x234   :  { %728 = vmatprep.subr.bf16.mxu0 %v2008_v20  ;;  %771 = vmatprep.subr.bf16.mxu1 %v2014_v22 }
 0x237   :  { %729 = vmatpush1.bf16.msra.mxu0 %v2017_v23  ;;  %772 = vmatpush1.bf16.msra.mxu1 %v2023_v25 }
 0x238   :  { %730 = vmatprep.subr.bf16.mxu0 %v2020_v24  ;;  %773 = vmatprep.subr.bf16.mxu1 %v2026_v26 }
 0x23b   :  { %731 = vmatpush1.bf16.msra.mxu0 %v2029_v27  ;;  %774 = vmatpush1.bf16.msra.mxu1 %v2035_v29 }
 0x23c   :  { %732 = vmatprep.subr.bf16.mxu0 %v2032_v28  ;;  %775 = vmatprep.subr.bf16.mxu1 %v2038_v30 }
 0x23f   :  { %733 = vmatpush1.bf16.msra.mxu0 %v2041_v31  ;;  %776 = vmatpush1.bf16.msra.mxu1 %v2045_v32 }
 0x240   :  { %872 = vmatprep.subr.bf16.mxu0 %v1954_v1  ;;  %915 = vmatprep.subr.bf16.mxu1 %v1959_v3 }
 0x2e2   :  { %v598_v48 = vpop.f32.mrf.mxu0  ;;  %v641_v49 = vpop.f32.mrf.mxu1 }
 0x2e3   :  { %v650_v50 = vadd.f32 %v598_v48, %v556_v45  ;;  %v652_v34 = vadd.f32 %v641_v49, %v558_v41 }
 0x2e4   :  { %v600_v54 = vpop.f32.mrf.mxu0  ;;  %v643_v59 = vpop.f32.mrf.mxu1 }
 0x2e5   :  { %v658_v55 = vmul.f32 0.5, %v650_v50  ;;  %v651_v52 = vadd.f32 %v600_v54, %v557_v47  ;;  %v653_v45 = vadd.f32 %v643_v59, %v559_v42 }
 0x2e6   :  { %v602_v60 = vpop.f32.mrf.mxu0  ;;  %v645_v39 = vpop.f32.mrf.mxu1 }
 0x2e7   :  { %1704 = vtanh.f32 %v658_v55  ;;  %v666_v62 = vmul.f32 0.5, %v651_v52  ;;  %v654_v33 = vadd.f32 %v602_v60, %v560_v53  ;;  %v656_v43 = vadd.f32 %v645_v39, %v562_v37 }
 0x2e8   :  { %v604_v35 = vpop.f32.mrf.mxu0  ;;  %v647_v56 = vpop.f32.mrf.mxu1  ;;  %v676_v49 = vmul.f32 0.5, %v653_v45 }
 0x2e9   :  { %1706 = vtanh.f32 %v666_v62  ;;  %v659_v51 = vmul.f32 0.5, %v654_v33  ;;  %v655_v38 = vadd.f32 %v604_v35, %v561_v57  ;;  %v657_v46 = vadd.f32 %v647_v56, %v563_v44 }
 0x2eb   :  { %1708 = vtanh.f32 %v659_v51  ;;  %v667_v40 = vmul.f32 0.5, %v655_v38  ;;  %v677_v53 = vmul.f32 0.5, %v657_v46 }
 0x2ec   :  { %1710 = vtanh.f32 %v652_v34 }
 0x2ed   :  { %1712 = vtanh.f32 %v667_v40 }
 0x2ee   :  { %1714 = vtanh.f32 %v656_v43 }
 0x2ef   :  { %1716 = vtanh.f32 %v676_v49 }
 0x2f0   :  { %1718 = vtanh.f32 %v677_v53 }
 0x2f4   :  { %v1705_v47 = vpop.eup %1704 }
 0x2f5   :  { %v662_v48 = vmul.f32 0.5, %v1705_v47 }
 0x2f6   :  { %v1707_v50 = vpop.eup %1706 }
 0x2f7   :  { %v664_v41 = vadd.f32 0.5, %v662_v48  ;;  %v670_v54 = vmul.f32 0.5, %v1707_v50 }
 0x2f8   :  { %v1709_v55 = vpop.eup %1708 }
 0x2f9   :  { %v1711_v52 = vpop.eup %1710  ;;  %v672_v57 = vadd.f32 0.5, %v670_v54  ;;  %v663_v60 = vmul.f32 0.5, %v1709_v55 }
 0x2fa   :  { %v1713_v36 = vpop.eup %1712  ;;  %v686_v62 = vmul.f32 %v1711_v52, %v664_v41 }
 0x2fb   :  { %v684_v61 = vmul.f32 %v672_v57, %v2127_v58  ;;  %v665_v59 = vadd.f32 0.5, %v663_v60  ;;  %v671_v33 = vmul.f32 0.5, %v1713_v36  ;;  %v1715_v51 = vpop.eup %1714 }
 0x2fc   :  { %v1717_v40 = vpop.eup %1716 }
 0x2fd   :  { %v2169_v34 = vadd.f32 %v686_v62, %v684_v61  ;;  %v673_v35 = vadd.f32 0.5, %v671_v33  ;;  %v687_v38 = vmul.f32 %v1715_v51, %v665_v59  ;;  %v1719_v42 = vpop.eup %1718  ;;  %v680_v43 = vmul.f32 0.5, %v1717_v40 }
 0x2fe   :  { %v681_v58 = vmul.f32 0.5, %v1719_v42 }
 0x2ff   :  { %v685_v37 = vmul.f32 %v673_v35, %v2131_v63  ;;  %1720 = vtanh.f32 %v2169_v34  ;;  %v682_v56 = vadd.f32 0.5, %v680_v43  ;;  %v709_v63 = vld [vmem:[#allocation6 + $0x78] sm:$0xff] }
 0x300   :  { %v683_v45 = vadd.f32 0.5, %v681_v58  ;;  %v716_v54 = vunpack.c.l.bf16 %v709_v63  ;;  %v717_v61 = vunpack.c.h.bf16 %v709_v63 }
 0x301   :  { %v2173_v39 = vadd.f32 %v687_v38, %v685_v37 }
 0x303   :  { %1722 = vtanh.f32 %v2173_v39 }
 0x30c   :  { %v1721_v44 = vpop.eup %1720 }
 0x30d   :  { %v692_v47 = vmul.f32 %v1721_v44, %v682_v56 }
 0x310   :  { %v1723_v46 = vpop.eup %1722 }
 0x311   :  { %v693_v48 = vmul.f32 %v1723_v46, %v683_v45 }
 0x313   :  { %v694_v49 = vpack.c.bf16 %v693_v48, %v692_v47 }
 0x315   :  { %1581 = vst [vmem:[#allocation9 + $0x10] sm:$0xff] %v694_v49   ;;  %751 = vmatmul.mubr.bf16.vlgmr.msra.gmra.mxu0 %v694_v49  ;;  %794 = vmatmul.mubr.bf16.vlgmr.msra.gmra.mxu1 %v694_v49 }
 0x316   :  { %873 = vmatpush1.bf16.msra.mxu0 %v1956_v2  ;;  %916 = vmatpush1.bf16.msra.mxu1 %v1961_v4  ;;  %v706_v2 = vld [vmem:[#allocation6 + $0x60] sm:$0xff] }
 0x317   :  { %874 = vmatprep.subr.bf16.mxu0 %v1964_v5  ;;  %917 = vmatprep.subr.bf16.mxu1 %v1969_v7  ;;  %v710_v4 = vunpack.c.l.bf16 %v706_v2  ;;  %v708_v5 = vld [vmem:[#allocation6 + $0x70] sm:$0xff]  ;;  %v711_v7 = vunpack.c.h.bf16 %v706_v2 }
 0x318   :  { %904 = vmatprep.mubr.bf16.mxu0 %v1926_v0  ;;  %947 = vmatprep.mubr.bf16.mxu1 %v1926_v0 }
 0x31a   :  { %875 = vmatpush1.bf16.msra.mxu0 %v1966_v6  ;;  %918 = vmatpush1.bf16.msra.mxu1 %v1973_v8  ;;  %v707_v6 = vld [vmem:[#allocation6 + $0x68] sm:$0xff] }
 0x31b   :  { %876 = vmatprep.subr.bf16.mxu0 %v1976_v9  ;;  %919 = vmatprep.subr.bf16.mxu1 %v1981_v11  ;;  %v714_v11 = vunpack.c.l.bf16 %v708_v5  ;;  %v713_v60 = vunpack.c.h.bf16 %v707_v6 }
 0x31e   :  { %877 = vmatpush1.bf16.msra.mxu0 %v1979_v10  ;;  %920 = vmatpush1.bf16.msra.mxu1 %v1987_v13 }
 0x31f   :  { %878 = vmatprep.subr.bf16.mxu0 %v1984_v12  ;;  %921 = vmatprep.subr.bf16.mxu1 %v1990_v14  ;;  %v712_v12 = vunpack.c.l.bf16 %v707_v6 }
 0x322   :  { %879 = vmatpush1.bf16.msra.mxu0 %v1993_v15  ;;  %922 = vmatpush1.bf16.msra.mxu1 %v1999_v17 }
 0x323   :  { %880 = vmatprep.subr.bf16.mxu0 %v1996_v16  ;;  %923 = vmatprep.subr.bf16.mxu1 %v2002_v18  ;;  %v715_v16 = vunpack.c.h.bf16 %v708_v5 }
 0x326   :  { %881 = vmatpush1.bf16.msra.mxu0 %v2005_v19  ;;  %924 = vmatpush1.bf16.msra.mxu1 %v2011_v21 }
 0x327   :  { %882 = vmatprep.subr.bf16.mxu0 %v2008_v20  ;;  %925 = vmatprep.subr.bf16.mxu1 %v2014_v22 }
 0x32a   :  { %883 = vmatpush1.bf16.msra.mxu0 %v2017_v23  ;;  %926 = vmatpush1.bf16.msra.mxu1 %v2023_v25 }
 0x32b   :  { %884 = vmatprep.subr.bf16.mxu0 %v2020_v24  ;;  %927 = vmatprep.subr.bf16.mxu1 %v2026_v26 }
 0x32e   :  { %885 = vmatpush1.bf16.msra.mxu0 %v2029_v27  ;;  %928 = vmatpush1.bf16.msra.mxu1 %v2035_v29 }
 0x32f   :  { %886 = vmatprep.subr.bf16.mxu0 %v2032_v28  ;;  %929 = vmatprep.subr.bf16.mxu1 %v2038_v30 }
 0x332   :  { %887 = vmatpush1.bf16.msra.mxu0 %v2041_v31  ;;  %930 = vmatpush1.bf16.msra.mxu1 %v2045_v32 }
 0x333   :  { %1026 = vmatprep.subr.bf16.mxu0 %v1954_v1  ;;  %1069 = vmatprep.subr.bf16.mxu1 %v1959_v3 }
 0x3d5   :  { %v752_v8 = vpop.f32.mrf.mxu0  ;;  %v795_v9 = vpop.f32.mrf.mxu1 }
 0x3d6   :  { %v804_v10 = vadd.f32 %v752_v8, %v710_v4  ;;  %v806_v50 = vadd.f32 %v795_v9, %v712_v12 }
 0x3d7   :  { %v754_v13 = vpop.f32.mrf.mxu0  ;;  %v797_v17 = vpop.f32.mrf.mxu1 }
 0x3d8   :  { %v812_v14 = vmul.f32 0.5, %v804_v10  ;;  %v805_v15 = vadd.f32 %v754_v13, %v711_v7  ;;  %v807_v59 = vadd.f32 %v797_v17, %v713_v60  ;;  %v2250_v60 = vld [vmem:[#allocation2 + $0x84] ss:$16 sps:$4 sm:$0xff]  }
 0x3d9   :  { %v756_v18 = vpop.f32.mrf.mxu0  ;;  %v799_v52 = vpop.f32.mrf.mxu1 }
 0x3da   :  { %1724 = vtanh.f32 %v812_v14  ;;  %v820_v1 = vmul.f32 0.5, %v805_v15  ;;  %v808_v3 = vadd.f32 %v756_v18, %v714_v11  ;;  %v810_v36 = vadd.f32 %v799_v52, %v716_v54  ;;  %v2238_v54 = vld [vmem:[#allocation2 + $0xa4] ss:$16 sps:$4 sm:$0xff]   ;;  %v2244_v52 = vld [vmem:[#allocation2 + $0xa0] ss:$16 sps:$4 sm:$0xff]  }
 0x3db   :  { %v758_v53 = vpop.f32.mrf.mxu0  ;;  %v801_v62 = vpop.f32.mrf.mxu1  ;;  %v830_v37 = vmul.f32 0.5, %v807_v59  ;;  %v2262_v59 = vld [vmem:[#allocation2 + $0x64] ss:$16 sps:$4 sm:$0xff]  }
 0x3dc   :  { %1726 = vtanh.f32 %v820_v1  ;;  %v813_v41 = vmul.f32 0.5, %v808_v3  ;;  %v809_v55 = vadd.f32 %v758_v53, %v715_v16  ;;  %v811_v33 = vadd.f32 %v801_v62, %v717_v61  ;;  %v2221_v1 = vld [vmem:[#allocation2 + $0xe8] ss:$16 sps:$4 sm:$0xff]   ;;  %v2224_v3 = vld [vmem:[#allocation2 + $0xc4] ss:$16 sps:$4 sm:$0xff]  }
 0x3dd   :  { %v2232_v53 = vld [vmem:[#allocation2 + $0xc0] ss:$16 sps:$4 sm:$0xff]   ;;  %v2259_v62 = vld [vmem:[#allocation2 + $0x88] ss:$16 sps:$4 sm:$0xff]  }
 0x3de   :  { %1728 = vtanh.f32 %v813_v41  ;;  %v821_v57 = vmul.f32 0.5, %v809_v55  ;;  %v831_v40 = vmul.f32 0.5, %v811_v33  ;;  %v2235_v41 = vld [vmem:[#allocation2 + $0xc8] ss:$16 sps:$4 sm:$0xff]   ;;  %v2241_v55 = vld [vmem:[#allocation2 + $0xac] ss:$16 sps:$4 sm:$0xff]  }
 0x3df   :  { %1730 = vtanh.f32 %v806_v50  ;;  %v2227_v50 = vld [vmem:[#allocation2 + $0xcc] ss:$16 sps:$4 sm:$0xff]   ;;  %v2256_v61 = vld [vmem:[#allocation2 + $0x80] ss:$16 sps:$4 sm:$0xff]  }
 0x3e0   :  { %1732 = vtanh.f32 %v821_v57  ;;  %v2247_v57 = vld [vmem:[#allocation2 + $0xa8] ss:$16 sps:$4 sm:$0xff]   ;;  %v2265_v33 = vld [vmem:[#allocation2 + $0x6c] ss:$16 sps:$4 sm:$0xff]  }
 0x3e1   :  { %1734 = vtanh.f32 %v810_v36  ;;  %v2253_v36 = vld [vmem:[#allocation2 + $0x8c] ss:$16 sps:$4 sm:$0xff]  }
 0x3e2   :  { %1736 = vtanh.f32 %v830_v37 }
 0x3e3   :  { %1738 = vtanh.f32 %v831_v40  ;;  %v863_v40 = vld [vmem:[#allocation6 + $0x98] sm:$0xff] }
 0x3e7   :  { %v1725_v35 = vpop.eup %1724 }
 0x3e8   :  { %v816_v51 = vmul.f32 0.5, %v1725_v35 }
 0x3e9   :  { %v1727_v38 = vpop.eup %1726 }
 0x3ea   :  { %v818_v42 = vadd.f32 0.5, %v816_v51  ;;  %v824_v43 = vmul.f32 0.5, %v1727_v38 }
 0x3eb   :  { %v1729_v58 = vpop.eup %1728 }
 0x3ec   :  { %v1731_v44 = vpop.eup %1730  ;;  %v826_v56 = vadd.f32 0.5, %v824_v43  ;;  %v817_v45 = vmul.f32 0.5, %v1729_v58 }
 0x3ed   :  { %v1733_v46 = vpop.eup %1732  ;;  %v840_v48 = vmul.f32 %v1731_v44, %v818_v42 }
 0x3ee   :  { %v838_v47 = vmul.f32 %v826_v56, %v2169_v34  ;;  %v819_v49 = vadd.f32 0.5, %v817_v45  ;;  %v825_v2 = vmul.f32 0.5, %v1733_v46  ;;  %v1735_v6 = vpop.eup %1734  ;;  %v870_v45 = vunpack.c.l.bf16 %v863_v40 }
 0x3ef   :  { %v1737_v10 = vpop.eup %1736 }
 0x3f0   :  { %v2211_v4 = vadd.f32 %v840_v48, %v838_v47  ;;  %v827_v5 = vadd.f32 0.5, %v825_v2  ;;  %v841_v8 = vmul.f32 %v1735_v6, %v819_v49  ;;  %v1739_v11 = vpop.eup %1738  ;;  %v834_v12 = vmul.f32 0.5, %v1737_v10 }
 0x3f1   :  { %v835_v34 = vmul.f32 0.5, %v1739_v11 }
 0x3f2   :  { %v839_v7 = vmul.f32 %v827_v5, %v2173_v39  ;;  %1740 = vtanh.f32 %v2211_v4  ;;  %v836_v14 = vadd.f32 0.5, %v834_v12  ;;  %v2218_v39 = vld [vmem:[#allocation2 + $0xe0] ss:$16 sps:$4 sm:$0xff]   ;;  %v871_v5 = vunpack.c.h.bf16 %v863_v40 }
 0x3f3   :  { %v837_v15 = vadd.f32 0.5, %v835_v34 }
 0x3f4   :  { %v2215_v9 = vadd.f32 %v841_v8, %v839_v7 }
 0x3f6   :  { %1742 = vtanh.f32 %v2215_v9 }
 0x3ff   :  { %v1741_v13 = vpop.eup %1740 }
 0x400   :  { %v846_v17 = vmul.f32 %v1741_v13, %v836_v14 }
 0x403   :  { %v1743_v16 = vpop.eup %1742 }
 0x404   :  { %v847_v18 = vmul.f32 %v1743_v16, %v837_v15 }
 0x406   :  { %v848_v63 = vpack.c.bf16 %v847_v18, %v846_v17 }
 0x408   :  { %1586 = vst [vmem:[#allocation9 + $0x18] sm:$0xff] %v848_v63   ;;  %905 = vmatmul.mubr.bf16.vlgmr.msra.gmra.mxu0 %v848_v63  ;;  %948 = vmatmul.mubr.bf16.vlgmr.msra.gmra.mxu1 %v848_v63 }
 0x409   :  { %1027 = vmatpush1.bf16.msra.mxu0 %v2218_v39  ;;  %1070 = vmatpush1.bf16.msra.mxu1 %v2221_v1 }
 0x40a   :  { %1028 = vmatprep.subr.bf16.mxu0 %v2224_v3  ;;  %1071 = vmatprep.subr.bf16.mxu1 %v2227_v50 }
 0x40b   :  { %1058 = vmatprep.mubr.bf16.mxu0 %v1926_v0  ;;  %1101 = vmatprep.mubr.bf16.mxu1 %v1926_v0 }
 0x40d   :  { %1029 = vmatpush1.bf16.msra.mxu0 %v2232_v53  ;;  %1072 = vmatpush1.bf16.msra.mxu1 %v2235_v41 }
 0x40e   :  { %1030 = vmatprep.subr.bf16.mxu0 %v2238_v54  ;;  %1073 = vmatprep.subr.bf16.mxu1 %v2241_v55 }
 0x411   :  { %1031 = vmatpush1.bf16.msra.mxu0 %v2244_v52  ;;  %1074 = vmatpush1.bf16.msra.mxu1 %v2247_v57 }
 0x412   :  { %1032 = vmatprep.subr.bf16.mxu0 %v2250_v60  ;;  %1075 = vmatprep.subr.bf16.mxu1 %v2253_v36 }
 0x415   :  { %1033 = vmatpush1.bf16.msra.mxu0 %v2256_v61  ;;  %1076 = vmatpush1.bf16.msra.mxu1 %v2259_v62 }
 0x416   :  { %1034 = vmatprep.subr.bf16.mxu0 %v2262_v59  ;;  %1077 = vmatprep.subr.bf16.mxu1 %v2265_v33 }
 0x419   :  { %1035 = vmatpush1.bf16.msra.mxu0 %v2005_v19  ;;  %1078 = vmatpush1.bf16.msra.mxu1 %v2011_v21  ;;  %v2282_v19 = vld [vmem:[#allocation2 + $0xe4] ss:$16 sps:$4 sm:$0xff]  }
 0x41a   :  { %1036 = vmatprep.subr.bf16.mxu0 %v2008_v20  ;;  %1079 = vmatprep.subr.bf16.mxu1 %v2014_v22  ;;  %v2285_v20 = vld [vmem:[#allocation2 + $0xec] ss:$16 sps:$4 sm:$0xff]   ;;  %v860_v21 = vld [vmem:[#allocation6 + $0x80] sm:$0xff] }
 0x41b   :  { %v864_v22 = vunpack.c.l.bf16 %v860_v21 }
 0x41d   :  { %1037 = vmatpush1.bf16.msra.mxu0 %v2017_v23  ;;  %1080 = vmatpush1.bf16.msra.mxu1 %v2023_v25  ;;  %v862_v23 = vld [vmem:[#allocation6 + $0x90] sm:$0xff]  ;;  %v865_v25 = vunpack.c.h.bf16 %v860_v21 }
 0x41e   :  { %1038 = vmatprep.subr.bf16.mxu0 %v2020_v24  ;;  %1081 = vmatprep.subr.bf16.mxu1 %v2026_v26  ;;  %v861_v24 = vld [vmem:[#allocation6 + $0x88] sm:$0xff]  ;;  %v869_v51 = vunpack.c.h.bf16 %v862_v23 }
 0x41f   :  { %v867_v49 = vunpack.c.h.bf16 %v861_v24 }
 0x421   :  { %1039 = vmatpush1.bf16.msra.mxu0 %v2029_v27  ;;  %1082 = vmatpush1.bf16.msra.mxu1 %v2035_v29  ;;  %v868_v29 = vunpack.c.l.bf16 %v862_v23 }
 0x422   :  { %1040 = vmatprep.subr.bf16.mxu0 %v2032_v28  ;;  %1083 = vmatprep.subr.bf16.mxu1 %v2038_v30  ;;  %v866_v30 = vunpack.c.l.bf16 %v861_v24 }
 0x425   :  { %1041 = vmatpush1.bf16.msra.mxu0 %v2041_v31  ;;  %1084 = vmatpush1.bf16.msra.mxu1 %v2045_v32 }
 0x426   :  { %1180 = vmatprep.subr.bf16.mxu0 %v2282_v19  ;;  %1223 = vmatprep.subr.bf16.mxu1 %v2285_v20 }
 0x4c8   :  { %v906_v26 = vpop.f32.mrf.mxu0  ;;  %v949_v27 = vpop.f32.mrf.mxu1 }
 0x4c9   :  { %v958_v28 = vadd.f32 %v906_v26, %v864_v22  ;;  %v960_v58 = vadd.f32 %v949_v27, %v866_v30 }
 0x4ca   :  { %v908_v31 = vpop.f32.mrf.mxu0  ;;  %v951_v37 = vpop.f32.mrf.mxu1 }
 0x4cb   :  { %v966_v32 = vmul.f32 0.5, %v958_v28  ;;  %v959_v35 = vadd.f32 %v908_v31, %v865_v25  ;;  %v961_v7 = vadd.f32 %v951_v37, %v867_v49  ;;  %v2332_v49 = vld [vmem:[#allocation2 + $0x24] ss:$16 sps:$4 sm:$0xff]  }
 0x4cc   :  { %v910_v38 = vpop.f32.mrf.mxu0  ;;  %v953_v47 = vpop.f32.mrf.mxu1 }
 0x4cd   :  { %1744 = vtanh.f32 %v966_v32  ;;  %v974_v42 = vmul.f32 0.5, %v959_v35  ;;  %v962_v43 = vadd.f32 %v910_v38, %v868_v29  ;;  %v964_v2 = vadd.f32 %v953_v47, %v870_v45  ;;  %v2320_v45 = vld [vmem:[#allocation2 + $0x44] ss:$16 sps:$4 sm:$0xff]   ;;  %v2326_v47 = vld [vmem:[#allocation2 + $0x40] ss:$16 sps:$4 sm:$0xff]  }
 0x4ce   :  { %v912_v44 = vpop.f32.mrf.mxu0  ;;  %v955_v6 = vpop.f32.mrf.mxu1  ;;  %v984_v12 = vmul.f32 0.5, %v961_v7  ;;  %v2344_v7 = vld [vmem:[#allocation2 + $0x4] ss:$16 sps:$4 sm:$0xff]  }
 0x4cf   :  { %1746 = vtanh.f32 %v974_v42  ;;  %v967_v56 = vmul.f32 0.5, %v962_v43  ;;  %v963_v46 = vadd.f32 %v912_v44, %v869_v51  ;;  %v965_v8 = vadd.f32 %v955_v6, %v871_v5  ;;  %v2338_v5 = vld [vmem:[#allocation2 + $0x20] ss:$16 sps:$4 sm:$0xff]   ;;  %v2341_v6 = vld [vmem:[#allocation2 + $0x28] ss:$16 sps:$4 sm:$0xff]  }
 0x4d1   :  { %1748 = vtanh.f32 %v967_v56  ;;  %v975_v48 = vmul.f32 0.5, %v963_v46  ;;  %v985_v13 = vmul.f32 0.5, %v965_v8  ;;  %v2317_v56 = vld [vmem:[#allocation2 + $0x68] ss:$16 sps:$4 sm:$0xff]   ;;  %v2323_v46 = vld [vmem:[#allocation2 + $0x4c] ss:$16 sps:$4 sm:$0xff]  }
 0x4d2   :  { %1750 = vtanh.f32 %v960_v58  ;;  %v2347_v8 = vld [vmem:[#allocation2 + $0xc] ss:$16 sps:$4 sm:$0xff]  }
 0x4d3   :  { %1752 = vtanh.f32 %v975_v48  ;;  %v2329_v48 = vld [vmem:[#allocation2 + $0x48] ss:$16 sps:$4 sm:$0xff]  }
 0x4d4   :  { %1754 = vtanh.f32 %v964_v2  ;;  %v2335_v2 = vld [vmem:[#allocation2 + $0x2c] ss:$16 sps:$4 sm:$0xff]  }
 0x4d5   :  { %1756 = vtanh.f32 %v984_v12  ;;  %v1014_v12 = vld [vmem:[#allocation6 + $0xa0] sm:$0xff] }
 0x4d6   :  { %1758 = vtanh.f32 %v985_v13  ;;  %v1016_v13 = vld [vmem:[#allocation6 + $0xb0] sm:$0xff] }
 0x4da   :  { %v1745_v10 = vpop.eup %1744 }
 0x4db   :  { %v970_v11 = vmul.f32 0.5, %v1745_v10  ;;  %v2350_v10 = vld [vmem:[#allocation2] ss:$16 sps:$4 sm:$0xff]  }
 0x4dc   :  { %v1747_v34 = vpop.eup %1746 }
 0x4dd   :  { %v972_v14 = vadd.f32 0.5, %v970_v11  ;;  %v978_v15 = vmul.f32 0.5, %v1747_v34  ;;  %v2353_v11 = vld [vmem:[#allocation2 + $0x8] ss:$16 sps:$4 sm:$0xff]   ;;  %v1018_v34 = vunpack.c.l.bf16 %v1014_v12 }
 0x4de   :  { %v1749_v16 = vpop.eup %1748 }
 0x4df   :  { %v1751_v17 = vpop.eup %1750  ;;  %v980_v18 = vadd.f32 0.5, %v978_v15  ;;  %v971_v63 = vmul.f32 0.5, %v1749_v16  ;;  %v1019_v15 = vunpack.c.h.bf16 %v1014_v12 }
 0x4e0   :  { %v1753_v21 = vpop.eup %1752  ;;  %v994_v23 = vmul.f32 %v1751_v17, %v972_v14  ;;  %v1015_v14 = vld [vmem:[#allocation6 + $0xa8] sm:$0xff] }
 0x4e1   :  { %v992_v22 = vmul.f32 %v980_v18, %v2211_v4  ;;  %v973_v24 = vadd.f32 0.5, %v971_v63  ;;  %v979_v25 = vmul.f32 0.5, %v1753_v21  ;;  %v1755_v28 = vpop.eup %1754  ;;  %v1022_v63 = vunpack.c.l.bf16 %v1016_v13 }
 0x4e2   :  { %v1757_v32 = vpop.eup %1756  ;;  %v1020_v21 = vunpack.c.l.bf16 %v1015_v14 }
 0x4e3   :  { %v2289_v26 = vadd.f32 %v994_v23, %v992_v22  ;;  %v981_v27 = vadd.f32 0.5, %v979_v25  ;;  %v995_v30 = vmul.f32 %v1755_v28, %v973_v24  ;;  %v1759_v35 = vpop.eup %1758  ;;  %v988_v51 = vmul.f32 0.5, %v1757_v32 }
 0x4e4   :  { %v989_v4 = vmul.f32 0.5, %v1759_v35  ;;  %v1023_v25 = vunpack.c.h.bf16 %v1016_v13 }
 0x4e5   :  { %v993_v29 = vmul.f32 %v981_v27, %v2215_v9  ;;  %1760 = vtanh.f32 %v2289_v26  ;;  %v990_v38 = vadd.f32 0.5, %v988_v51  ;;  %v2314_v9 = vld [vmem:[#allocation2 + $0x60] ss:$16 sps:$4 sm:$0xff]  }
 0x4e6   :  { %v991_v40 = vadd.f32 0.5, %v989_v4 }
 0x4e7   :  { %v2293_v31 = vadd.f32 %v995_v30, %v993_v29  ;;  %v1017_v29 = vld [vmem:[#allocation6 + $0xb8] sm:$0xff] }
 0x4e8   :  { %v1024_v51 = vunpack.c.l.bf16 %v1017_v29 }
 0x4e9   :  { %1762 = vtanh.f32 %v2293_v31 }
 0x4f2   :  { %v1761_v37 = vpop.eup %1760 }
 0x4f3   :  { %v1000_v43 = vmul.f32 %v1761_v37, %v990_v38 }
 0x4f6   :  { %v1763_v42 = vpop.eup %1762 }
 0x4f7   :  { %v1001_v58 = vmul.f32 %v1763_v42, %v991_v40  ;;  %v1021_v40 = vunpack.c.h.bf16 %v1015_v14 }
 0x4f9   :  { %v1002_v44 = vpack.c.bf16 %v1001_v58, %v1000_v43  ;;  %v1025_v43 = vunpack.c.h.bf16 %v1017_v29 }
 0x4fb   :  { %1591 = vst [vmem:[#allocation9 + $0x20] sm:$0xff] %v1002_v44   ;;  %1059 = vmatmul.mubr.bf16.vlgmr.msra.gmra.mxu0 %v1002_v44  ;;  %1102 = vmatmul.mubr.bf16.vlgmr.msra.gmra.mxu1 %v1002_v44 }
 0x4fc   :  { %1181 = vmatpush1.bf16.msra.mxu0 %v2218_v39  ;;  %1224 = vmatpush1.bf16.msra.mxu1 %v2221_v1 }
 0x4fd   :  { %1182 = vmatprep.subr.bf16.mxu0 %v2224_v3  ;;  %1225 = vmatprep.subr.bf16.mxu1 %v2227_v50 }
 0x4fe   :  { %1212 = vmatprep.mubr.bf16.mxu0 %v1926_v0  ;;  %1255 = vmatprep.mubr.bf16.mxu1 %v1926_v0 }
 0x500   :  { %1183 = vmatpush1.bf16.msra.mxu0 %v2232_v53  ;;  %1226 = vmatpush1.bf16.msra.mxu1 %v2235_v41 }
 0x501   :  { %1184 = vmatprep.subr.bf16.mxu0 %v2238_v54  ;;  %1227 = vmatprep.subr.bf16.mxu1 %v2241_v55 }
 0x504   :  { %1185 = vmatpush1.bf16.msra.mxu0 %v2244_v52  ;;  %1228 = vmatpush1.bf16.msra.mxu1 %v2247_v57 }
 0x505   :  { %1186 = vmatprep.subr.bf16.mxu0 %v2250_v60  ;;  %1229 = vmatprep.subr.bf16.mxu1 %v2253_v36 }
 0x508   :  { %1187 = vmatpush1.bf16.msra.mxu0 %v2256_v61  ;;  %1230 = vmatpush1.bf16.msra.mxu1 %v2259_v62 }
 0x509   :  { %1188 = vmatprep.subr.bf16.mxu0 %v2262_v59  ;;  %1231 = vmatprep.subr.bf16.mxu1 %v2265_v33 }
 0x50c   :  { %1189 = vmatpush1.bf16.msra.mxu0 %v2314_v9  ;;  %1232 = vmatpush1.bf16.msra.mxu1 %v2317_v56 }
 0x50d   :  { %1190 = vmatprep.subr.bf16.mxu0 %v2320_v45  ;;  %1233 = vmatprep.subr.bf16.mxu1 %v2323_v46 }
 0x510   :  { %1191 = vmatpush1.bf16.msra.mxu0 %v2326_v47  ;;  %1234 = vmatpush1.bf16.msra.mxu1 %v2329_v48 }
 0x511   :  { %1192 = vmatprep.subr.bf16.mxu0 %v2332_v49  ;;  %1235 = vmatprep.subr.bf16.mxu1 %v2335_v2 }
 0x514   :  { %1193 = vmatpush1.bf16.msra.mxu0 %v2338_v5  ;;  %1236 = vmatpush1.bf16.msra.mxu1 %v2341_v6 }
 0x515   :  { %1194 = vmatprep.subr.bf16.mxu0 %v2344_v7  ;;  %1237 = vmatprep.subr.bf16.mxu1 %v2347_v8 }
 0x518   :  { %1195 = vmatpush1.bf16.msra.mxu0 %v2350_v10  ;;  %1238 = vmatpush1.bf16.msra.mxu1 %v2353_v11 }
 0x519   :  { %1334 = vmatprep.subr.bf16.mxu0 %v2282_v19  ;;  %1377 = vmatprep.subr.bf16.mxu1 %v2285_v20 }
 0x5bb   :  { %v1060_v16 = vpop.f32.mrf.mxu0  ;;  %v1103_v17 = vpop.f32.mrf.mxu1 }
 0x5bc   :  { %v1112_v18 = vadd.f32 %v1060_v16, %v1018_v34  ;;  %v1114_v30 = vadd.f32 %v1103_v17, %v1020_v21 }
 0x5bd   :  { %v1062_v22 = vpop.f32.mrf.mxu0  ;;  %v1105_v27 = vpop.f32.mrf.mxu1 }
 0x5be   :  { %v1120_v23 = vmul.f32 0.5, %v1112_v18  ;;  %v1113_v24 = vadd.f32 %v1062_v22, %v1019_v15  ;;  %v1115_v44 = vadd.f32 %v1105_v27, %v1021_v40 }
 0x5bf   :  { %v1064_v28 = vpop.f32.mrf.mxu0  ;;  %v1107_v37 = vpop.f32.mrf.mxu1 }
 0x5c0   :  { %1764 = vtanh.f32 %v1120_v23  ;;  %v1128_v19 = vmul.f32 0.5, %v1113_v24  ;;  %v1116_v20 = vadd.f32 %v1064_v28, %v1022_v63  ;;  %v1118_v42 = vadd.f32 %v1107_v37, %v1024_v51 }
 0x5c1   :  { %v1066_v32 = vpop.f32.mrf.mxu0  ;;  %v1109_v58 = vpop.f32.mrf.mxu1  ;;  %v1138_v15 = vmul.f32 0.5, %v1115_v44 }
 0x5c2   :  { %1766 = vtanh.f32 %v1128_v19  ;;  %v1121_v35 = vmul.f32 0.5, %v1116_v20  ;;  %v1117_v4 = vadd.f32 %v1066_v32, %v1023_v25  ;;  %v1119_v12 = vadd.f32 %v1109_v58, %v1025_v43 }
 0x5c4   :  { %1768 = vtanh.f32 %v1121_v35  ;;  %v1129_v38 = vmul.f32 0.5, %v1117_v4  ;;  %v1139_v17 = vmul.f32 0.5, %v1119_v12 }
 0x5c5   :  { %1770 = vtanh.f32 %v1114_v30 }
 0x5c6   :  { %1772 = vtanh.f32 %v1129_v38 }
 0x5c7   :  { %1774 = vtanh.f32 %v1118_v42 }
 0x5c8   :  { %1776 = vtanh.f32 %v1138_v15 }
 0x5c9   :  { %1778 = vtanh.f32 %v1139_v17 }
 0x5cd   :  { %v1765_v34 = vpop.eup %1764 }
 0x5ce   :  { %v1124_v13 = vmul.f32 0.5, %v1765_v34 }
 0x5cf   :  { %v1767_v16 = vpop.eup %1766 }
 0x5d0   :  { %v1126_v18 = vadd.f32 0.5, %v1124_v13  ;;  %v1132_v63 = vmul.f32 0.5, %v1767_v16 }
 0x5d1   :  { %v1769_v21 = vpop.eup %1768 }
 0x5d2   :  { %v1771_v22 = vpop.eup %1770  ;;  %v1134_v23 = vadd.f32 0.5, %v1132_v63  ;;  %v1125_v24 = vmul.f32 0.5, %v1769_v21 }
 0x5d3   :  { %v1773_v14 = vpop.eup %1772  ;;  %v1148_v28 = vmul.f32 %v1771_v22, %v1126_v18 }
 0x5d4   :  { %v1146_v25 = vmul.f32 %v1134_v23, %v2289_v26  ;;  %v1127_v27 = vadd.f32 0.5, %v1125_v24  ;;  %v1133_v29 = vmul.f32 0.5, %v1773_v14  ;;  %v1775_v30 = vpop.eup %1774 }
 0x5d5   :  { %v1777_v4 = vpop.eup %1776 }
 0x5d6   :  { %v2359_v19 = vadd.f32 %v1148_v28, %v1146_v25  ;;  %v1135_v20 = vadd.f32 0.5, %v1133_v29  ;;  %v1149_v35 = vmul.f32 %v1775_v30, %v1127_v27  ;;  %v1779_v37 = vpop.eup %1778  ;;  %v1142_v38 = vmul.f32 0.5, %v1777_v4 }
 0x5d7   :  { %v1143_v26 = vmul.f32 0.5, %v1779_v37 }
 0x5d8   :  { %v1147_v32 = vmul.f32 %v1135_v20, %v2293_v31  ;;  %1780 = vtanh.f32 %v2359_v19  ;;  %v1144_v42 = vadd.f32 0.5, %v1142_v38 }
 0x5d9   :  { %v1145_v43 = vadd.f32 0.5, %v1143_v26 }
 0x5da   :  { %v2363_v51 = vadd.f32 %v1149_v35, %v1147_v32 }
 0x5dc   :  { %1782 = vtanh.f32 %v2363_v51 }
 0x5e5   :  { %v1781_v40 = vpop.eup %1780 }
 0x5e6   :  { %v1154_v44 = vmul.f32 %v1781_v40, %v1144_v42 }
 0x5e9   :  { %v1783_v58 = vpop.eup %1782 }
 0x5ea   :  { %v1155_v12 = vmul.f32 %v1783_v58, %v1145_v43 }
 0x5ec   :  { %v1156_v34 = vpack.c.bf16 %v1155_v12, %v1154_v44 }
 0x5ee   :  { %1596 = vst [vmem:[#allocation9 + $0x28] sm:$0xff] %v1156_v34   ;;  %1213 = vmatmul.mubr.bf16.vlgmr.msra.gmra.mxu0 %v1156_v34  ;;  %1256 = vmatmul.mubr.bf16.vlgmr.msra.gmra.mxu1 %v1156_v34 }
 0x5ef   :  { %1335 = vmatpush1.bf16.msra.mxu0 %v2218_v39  ;;  %1378 = vmatpush1.bf16.msra.mxu1 %v2221_v1  ;;  %v1170_v1 = vld [vmem:[#allocation6 + $0xd0] sm:$0xff] }
 0x5f0   :  { %1336 = vmatprep.subr.bf16.mxu0 %v2224_v3  ;;  %1379 = vmatprep.subr.bf16.mxu1 %v2227_v50  ;;  %v1169_v3 = vld [vmem:[#allocation6 + $0xc8] sm:$0xff] }
 0x5f1   :  { %1366 = vmatprep.mubr.bf16.mxu0 %v1926_v0  ;;  %1409 = vmatprep.mubr.bf16.mxu1 %v1926_v0  ;;  %v1168_v0 = vld [vmem:[#allocation6 + $0xc0] sm:$0xff] }
 0x5f2   :  { %v1172_v39 = vunpack.c.l.bf16 %v1168_v0  ;;  %v1173_v50 = vunpack.c.h.bf16 %v1168_v0 }
 0x5f3   :  { %1337 = vmatpush1.bf16.msra.mxu0 %v2232_v53  ;;  %1380 = vmatpush1.bf16.msra.mxu1 %v2235_v41 }
 0x5f4   :  { %1338 = vmatprep.subr.bf16.mxu0 %v2238_v54  ;;  %1381 = vmatprep.subr.bf16.mxu1 %v2241_v55  ;;  %v1176_v55 = vunpack.c.l.bf16 %v1170_v1 }
 0x5f7   :  { %1339 = vmatpush1.bf16.msra.mxu0 %v2244_v52  ;;  %1382 = vmatpush1.bf16.msra.mxu1 %v2247_v57  ;;  %v1174_v52 = vunpack.c.l.bf16 %v1169_v3 }
 0x5f8   :  { %1340 = vmatprep.subr.bf16.mxu0 %v2250_v60  ;;  %1383 = vmatprep.subr.bf16.mxu1 %v2253_v36 }
 0x5fb   :  { %1341 = vmatpush1.bf16.msra.mxu0 %v2256_v61  ;;  %1384 = vmatpush1.bf16.msra.mxu1 %v2259_v62  ;;  %v1177_v61 = vunpack.c.h.bf16 %v1170_v1 }
 0x5fc   :  { %1342 = vmatprep.subr.bf16.mxu0 %v2262_v59  ;;  %1385 = vmatprep.subr.bf16.mxu1 %v2265_v33  ;;  %v1171_v33 = vld [vmem:[#allocation6 + $0xd8] sm:$0xff] }
 0x5ff   :  { %1343 = vmatpush1.bf16.msra.mxu0 %v2314_v9  ;;  %1386 = vmatpush1.bf16.msra.mxu1 %v2317_v56 }
 0x600   :  { %1344 = vmatprep.subr.bf16.mxu0 %v2320_v45  ;;  %1387 = vmatprep.subr.bf16.mxu1 %v2323_v46 }
 0x603   :  { %1345 = vmatpush1.bf16.msra.mxu0 %v2326_v47  ;;  %1388 = vmatpush1.bf16.msra.mxu1 %v2329_v48  ;;  %v1178_v47 = vunpack.c.l.bf16 %v1171_v33 }
 0x604   :  { %1346 = vmatprep.subr.bf16.mxu0 %v2332_v49  ;;  %1389 = vmatprep.subr.bf16.mxu1 %v2335_v2 }
 0x607   :  { %1347 = vmatpush1.bf16.msra.mxu0 %v2338_v5  ;;  %1390 = vmatpush1.bf16.msra.mxu1 %v2341_v6  ;;  %v1175_v5 = vunpack.c.h.bf16 %v1169_v3  ;;  %v1324_v3 = vld [vmem:[#allocation6 + $0xf0] sm:$0xff] }
 0x608   :  { %1348 = vmatprep.subr.bf16.mxu0 %v2344_v7  ;;  %1391 = vmatprep.subr.bf16.mxu1 %v2347_v8  ;;  %v1179_v7 = vunpack.c.h.bf16 %v1171_v33 }
 0x60b   :  { %1349 = vmatpush1.bf16.msra.mxu0 %v2350_v10  ;;  %1392 = vmatpush1.bf16.msra.mxu1 %v2353_v11 }
 0x6ae   :  { %v1214_v53 = vpop.f32.mrf.mxu0  ;;  %v1257_v41 = vpop.f32.mrf.mxu1 }
 0x6af   :  { %v1266_v54 = vadd.f32 %v1214_v53, %v1172_v39  ;;  %v1268_v56 = vadd.f32 %v1257_v41, %v1174_v52  ;;  %v1330_v52 = vunpack.c.l.bf16 %v1324_v3 }
 0x6b0   :  { %v1216_v57 = vpop.f32.mrf.mxu0  ;;  %v1259_v62 = vpop.f32.mrf.mxu1 }
 0x6b1   :  { %v1274_v60 = vmul.f32 0.5, %v1266_v54  ;;  %v1267_v36 = vadd.f32 %v1216_v57, %v1173_v50  ;;  %v1269_v10 = vadd.f32 %v1259_v62, %v1175_v5  ;;  %v1323_v50 = vld [vmem:[#allocation6 + $0xe8] sm:$0xff]  ;;  %v1331_v62 = vunpack.c.h.bf16 %v1324_v3 }
 0x6b2   :  { %v1218_v59 = vpop.f32.mrf.mxu0  ;;  %v1261_v49 = vpop.f32.mrf.mxu1  ;;  %v1328_v57 = vunpack.c.l.bf16 %v1323_v50 }
 0x6b3   :  { %1784 = vtanh.f32 %v1274_v60  ;;  %v1282_v31 = vmul.f32 0.5, %v1267_v36  ;;  %v1270_v9 = vadd.f32 %v1218_v59, %v1176_v55  ;;  %v1272_v6 = vadd.f32 %v1261_v49, %v1178_v47 }
 0x6b4   :  { %v1220_v45 = vpop.f32.mrf.mxu0  ;;  %v1263_v8 = vpop.f32.mrf.mxu1  ;;  %v1292_v16 = vmul.f32 0.5, %v1269_v10 }
 0x6b5   :  { %1786 = vtanh.f32 %v1282_v31  ;;  %v1275_v46 = vmul.f32 0.5, %v1270_v9  ;;  %v1271_v48 = vadd.f32 %v1220_v45, %v1177_v61  ;;  %v1273_v11 = vadd.f32 %v1263_v8, %v1179_v7  ;;  %v1325_v31 = vld [vmem:[#allocation6 + $0xf8] sm:$0xff] }
 0x6b6   :  { %v1333_v8 = vunpack.c.h.bf16 %v1325_v31 }
 0x6b7   :  { %1788 = vtanh.f32 %v1275_v46  ;;  %v1283_v2 = vmul.f32 0.5, %v1271_v48  ;;  %v1293_v18 = vmul.f32 0.5, %v1273_v11  ;;  %v1332_v48 = vunpack.c.l.bf16 %v1325_v31 }
 0x6b8   :  { %1790 = vtanh.f32 %v1268_v56 }
 0x6b9   :  { %1792 = vtanh.f32 %v1283_v2 }
 0x6ba   :  { %1794 = vtanh.f32 %v1272_v6  ;;  %v1329_v6 = vunpack.c.h.bf16 %v1323_v50 }
 0x6bb   :  { %1796 = vtanh.f32 %v1292_v16 }
 0x6bc   :  { %1798 = vtanh.f32 %v1293_v18 }
 0x6c0   :  { %v1785_v13 = vpop.eup %1784 }
 0x6c1   :  { %v1278_v15 = vmul.f32 0.5, %v1785_v13 }
 0x6c2   :  { %v1787_v17 = vpop.eup %1786 }
 0x6c3   :  { %v1280_v63 = vadd.f32 0.5, %v1278_v15  ;;  %v1286_v21 = vmul.f32 0.5, %v1787_v17 }
 0x6c4   :  { %v1789_v22 = vpop.eup %1788 }
 0x6c5   :  { %v1791_v23 = vpop.eup %1790  ;;  %v1288_v24 = vadd.f32 0.5, %v1286_v21  ;;  %v1279_v14 = vmul.f32 0.5, %v1789_v22 }
 0x6c6   :  { %v1793_v25 = vpop.eup %1792  ;;  %v1302_v27 = vmul.f32 %v1791_v23, %v1280_v63 }
 0x6c7   :  { %v1300_v28 = vmul.f32 %v1288_v24, %v2359_v19  ;;  %v1281_v29 = vadd.f32 0.5, %v1279_v14  ;;  %v1287_v20 = vmul.f32 0.5, %v1793_v25  ;;  %v1795_v35 = vpop.eup %1794 }
 0x6c8   :  { %v1797_v26 = vpop.eup %1796 }
 0x6c9   :  { %v2399_v30 = vadd.f32 %v1302_v27, %v1300_v28  ;;  %v1289_v32 = vadd.f32 0.5, %v1287_v20  ;;  %v1303_v37 = vmul.f32 %v1795_v35, %v1281_v29  ;;  %v1799_v40 = vpop.eup %1798  ;;  %v1296_v42 = vmul.f32 0.5, %v1797_v26 }
 0x6ca   :  { %v1297_v19 = vmul.f32 0.5, %v1799_v40 }
 0x6cb   :  { %v1301_v4 = vmul.f32 %v1289_v32, %v2363_v51  ;;  %1800 = vtanh.f32 %v2399_v30  ;;  %v1298_v58 = vadd.f32 0.5, %v1296_v42  ;;  %v1322_v51 = vld [vmem:[#allocation6 + $0xe0] sm:$0xff] }
 0x6cc   :  { %v1299_v44 = vadd.f32 0.5, %v1297_v19  ;;  %v1326_v1 = vunpack.c.l.bf16 %v1322_v51  ;;  %v1327_v53 = vunpack.c.h.bf16 %v1322_v51 }
 0x6cd   :  { %v2403_v38 = vadd.f32 %v1303_v37, %v1301_v4 }
 0x6cf   :  { %1802 = vtanh.f32 %v2403_v38 }
 0x6d8   :  { %v1801_v43 = vpop.eup %1800 }
 0x6d9   :  { %v1308_v34 = vmul.f32 %v1801_v43, %v1298_v58 }
 0x6dc   :  { %v1803_v12 = vpop.eup %1802 }
 0x6dd   :  { %v1309_v0 = vmul.f32 %v1803_v12, %v1299_v44 }
 0x6df   :  { %v1310_v39 = vpack.c.bf16 %v1309_v0, %v1308_v34 }
 0x6e1   :  { %1601 = vst [vmem:[#allocation9 + $0x30] sm:$0xff] %v1310_v39   ;;  %1367 = vmatmul.mubr.bf16.vlgmr.msra.gmra.mxu0 %v1310_v39  ;;  %1410 = vmatmul.mubr.bf16.vlgmr.msra.gmra.mxu1 %v1310_v39 }
 0x7a1   :  { %v1368_v41 = vpop.f32.mrf.mxu0  ;;  %v1411_v54 = vpop.f32.mrf.mxu1 }
 0x7a2   :  { %v1420_v55 = vadd.f32 %v1368_v41, %v1326_v1  ;;  %v1422_v45 = vadd.f32 %v1411_v54, %v1328_v57 }
 0x7a3   :  { %v1370_v60 = vpop.f32.mrf.mxu0  ;;  %v1413_v59 = vpop.f32.mrf.mxu1 }
 0x7a4   :  { %v1428_v36 = vmul.f32 0.5, %v1420_v55  ;;  %v1421_v61 = vadd.f32 %v1370_v60, %v1327_v53  ;;  %v1423_v11 = vadd.f32 %v1413_v59, %v1329_v6 }
 0x7a5   :  { %v1372_v33 = vpop.f32.mrf.mxu0  ;;  %v1415_v2 = vpop.f32.mrf.mxu1 }
 0x7a6   :  { %1804 = vtanh.f32 %v1428_v36  ;;  %v1436_v9 = vmul.f32 0.5, %v1421_v61  ;;  %v1424_v56 = vadd.f32 %v1372_v33, %v1330_v52  ;;  %v1426_v7 = vadd.f32 %v1415_v2, %v1332_v48 }
 0x7a7   :  { %v1374_v46 = vpop.f32.mrf.mxu0  ;;  %v1417_v10 = vpop.f32.mrf.mxu1  ;;  %v1446_v17 = vmul.f32 0.5, %v1423_v11 }
 0x7a8   :  { %1806 = vtanh.f32 %v1436_v9  ;;  %v1429_v47 = vmul.f32 0.5, %v1424_v56  ;;  %v1425_v49 = vadd.f32 %v1374_v46, %v1331_v62  ;;  %v1427_v13 = vadd.f32 %v1417_v10, %v1333_v8 }
 0x7aa   :  { %1808 = vtanh.f32 %v1429_v47  ;;  %v1437_v5 = vmul.f32 0.5, %v1425_v49  ;;  %v1447_v63 = vmul.f32 0.5, %v1427_v13 }
 0x7ab   :  { %1810 = vtanh.f32 %v1422_v45 }
 0x7ac   :  { %1812 = vtanh.f32 %v1437_v5 }
 0x7ad   :  { %1814 = vtanh.f32 %v1426_v7 }
 0x7ae   :  { %1816 = vtanh.f32 %v1446_v17 }
 0x7af   :  { %1818 = vtanh.f32 %v1447_v63 }
 0x7b3   :  { %v1805_v15 = vpop.eup %1804 }
 0x7b4   :  { %v1432_v16 = vmul.f32 0.5, %v1805_v15 }
 0x7b5   :  { %v1807_v18 = vpop.eup %1806 }
 0x7b6   :  { %v1434_v21 = vadd.f32 0.5, %v1432_v16  ;;  %v1440_v22 = vmul.f32 0.5, %v1807_v18 }
 0x7b7   :  { %v1809_v23 = vpop.eup %1808 }
 0x7b8   :  { %v1811_v24 = vpop.eup %1810  ;;  %v1442_v14 = vadd.f32 0.5, %v1440_v22  ;;  %v1433_v25 = vmul.f32 0.5, %v1809_v23 }
 0x7b9   :  { %v1813_v28 = vpop.eup %1812  ;;  %v1456_v29 = vmul.f32 %v1811_v24, %v1434_v21 }
 0x7ba   :  { %v1454_v27 = vmul.f32 %v1442_v14, %v2399_v30  ;;  %v1435_v20 = vadd.f32 0.5, %v1433_v25  ;;  %v1441_v32 = vmul.f32 0.5, %v1813_v28  ;;  %v1815_v37 = vpop.eup %1814 }
 0x7bb   :  { %v1817_v19 = vpop.eup %1816 }
 0x7bc   :  { %v1458_v35 = vadd.f32 %v1456_v29, %v1454_v27  ;;  %v1443_v4 = vadd.f32 0.5, %v1441_v32  ;;  %v1457_v40 = vmul.f32 %v1815_v37, %v1435_v20  ;;  %v1819_v43 = vpop.eup %1818  ;;  %v1450_v58 = vmul.f32 0.5, %v1817_v19 }
 0x7bd   :  { %v1451_v44 = vmul.f32 0.5, %v1819_v43 }
 0x7be   :  { %v1455_v26 = vmul.f32 %v1443_v4, %v2403_v38  ;;  %1820 = vtanh.f32 %v1458_v35  ;;  %v1452_v34 = vadd.f32 0.5, %v1450_v58 }
 0x7bf   :  { %v1453_v0 = vadd.f32 0.5, %v1451_v44 }
 0x7c0   :  { %v1459_v42 = vadd.f32 %v1457_v40, %v1455_v26 }
 0x7c2   :  { %1822 = vtanh.f32 %v1459_v42 }
 0x7cb   :  { %v1821_v12 = vpop.eup %1820 }
 0x7cc   :  { %v1462_v39 = vmul.f32 %v1821_v12, %v1452_v34 }
 0x7cf   :  { %v1823_v30 = vpop.eup %1822 }
 0x7d0   :  { %v1463_v51 = vmul.f32 %v1823_v30, %v1453_v0 }
 0x7d2   :  { %v1605_v1 = vpack.c.bf16 %v1463_v51, %v1462_v39 }
 0x7d4   :  { %1606 = vst [vmem:[#allocation9 + $0x38] sm:$0xff] %v1605_v1  }
 0x7d5   :  { %1907 = shalt.err (!%p1904_p0)
}
 0x7d6   :  { %s1929_s22 = smov 64   ;;  %s1930_s23 = smov 4  }
 0x7d7   :  { %1490 = dma.vmem_to_hbm [thread:$0]  %s1485_s1, 1024, %s2413_s2, [#allocation8], %s1929_s22, %s1929_s22, %s1930_s23  }
 0x7d8   :  { %1920 = dma.done.wait [#allocation8], 1024  }
 0x7d9   :  { %1921 = vsyncadd [#allocation8], 4294966272 }
 0x7da   :  { %1494 = vsyncpa [#allocation7], 1 }
 0x7db   :  { %1495 = vsyncpa [#allocation8], 1 }
 0x7dc   :  { %1496 = vsyncmov [#allocation5] }
 0x7df   :  { %s1497_s26 = vpop.sfrf %1496 }
 0x7e0   :  { %p1550_p1 = scmp.ne.s32.totalorder %s1497_s26, 0 }
 0x7e2   :  { %1501 = shalt.err (%p1550_p1)  }

</bundles_post_ra>
